<compile_context>
chip_gen: v5e
topology: v5e:2x2
jax: 0.10.0
libtpu: 0.0.40
codegen_flags: <defaults>
</compile_context>

<pallas_src>
import functools

import jax
import jax.numpy as jnp
from jax.experimental import pallas as pl
from jax.experimental.pallas import tpu as pltpu

LN_EPS = 1e-8     # asteroid _LayerNorm EPS
BN_EPS = 1e-5     # torch.nn.BatchNorm1d eps


# ----------------------------------------------------------------------------
# Fused Pallas kernel: front (cLN + 1x1 conv) -> all Conv1DBlocks -> out head
# ----------------------------------------------------------------------------
def fused_tcn_kernel(
    feats_ref,                 # (in_chan, T_pad)
    fr_gb_ref,                 # (in_chan, 2)   front cLN [gamma, beta]
    fr_w_ref, fr_b_ref,        # (bn, in_chan), (bn, 1)
    w1_all_ref,                # (nblk, hid, bn)
    bcol_all_ref,              # (nblk, hid, 2) columns: [b1, db_folded]
    dw_all_ref,                # (nblk, hid, ksz)  depthwise weights * s1 (BN1 folded)
    wr_all_ref,                # (nblk, bn, hid)   res 1x1 weights * s2 (BN2 folded)
    br_all_ref,                # (nblk, bn, 1)     res bias + wr @ t2
    out_gb_ref,                # (bn, 2)        out cLN [gamma, beta]
    out_w_ref, out_b_ref,      # (n_out, bn), (n_out, 1)
    alphas_ref,                # SMEM (2*nblk + 1,)  PReLU alphas
    o_ref,                     # (n_out, T_pad)
    *, dilations, ksz,
):
    nblk = len(dilations)

    # ---- front: cLN (per-frame over channels) + 1x1 conv --------------------
    x = feats_ref[...]                                    # (in_chan, T_pad)
    t_pad = x.shape[1]
    mean = jnp.mean(x, axis=0, keepdims=True)
    var = jnp.mean((x - mean) ** 2, axis=0, keepdims=True)
    xn = (x - mean) * jax.lax.rsqrt(var + LN_EPS)
    fr_gb = fr_gb_ref[...]
    xn = xn * fr_gb[:, 0:1] + fr_gb[:, 1:2]
    x = jnp.dot(fr_w_ref[...], xn, preferred_element_type=jnp.float32) + fr_b_ref[...]

    # Load all stacked block params once (tiny; stays in VMEM/vregs).
    w1_all = w1_all_ref[...]
    bcol_all = bcol_all_ref[...]
    dw_all = dw_all_ref[...]
    wr_all = wr_all_ref[...]
    br_all = br_all_ref[...]

    # ---- Conv1DBlocks (statically unrolled; dilation differs per block) -----
    for blk, dil in enumerate(dilations):
        w1 = w1_all[blk]                                  # (hid, bn)
        bcol = bcol_all[blk]                              # (hid, 2)
        b1 = bcol[:, 0:1]
        db = bcol[:, 1:2]
        dw = dw_all[blk]                                  # (hid, ksz)
        wr = wr_all[blk]                                  # (bn, hid)
        br = br_all[blk]                                  # (bn, 1)
        a1 = alphas_ref[2 * blk]
        a2 = alphas_ref[2 * blk + 1]

        # 1x1 conv -> PReLU   (BN1 already folded into dw/db)
        h = jnp.dot(w1, x, preferred_element_type=jnp.float32) + b1
        h = jnp.where(h >= 0, h, a1 * h)

        # depthwise dilated conv at full lane width via XLU rolls; the
        # wrapped tail only lands beyond the valid (left-aligned) region.
        acc = dw[:, 0:1] * h + db
        for j in range(1, ksz):
            hj = pltpu.roll(h, shift=t_pad - j * dil, axis=1)
            acc = acc + dw[:, j:j + 1] * hj

        # PReLU -> residual 1x1 (BN2 folded) -> residual add (left-aligned)
        acc = jnp.where(acc >= 0, acc, a2 * acc)
        res = jnp.dot(wr, acc, preferred_element_type=jnp.float32) + br
        x = x + res

    # ---- output head: PReLU -> cLN -> 1x1 conv -------------------------------
    a_out = alphas_ref[2 * nblk]
    h = jnp.where(x >= 0, x, a_out * x)
    mean = jnp.mean(h, axis=0, keepdims=True)
    var = jnp.mean((h - mean) ** 2, axis=0, keepdims=True)
    hn = (h - mean) * jax.lax.rsqrt(var + LN_EPS)
    out_gb = out_gb_ref[...]
    hn = hn * out_gb[:, 0:1] + out_gb[:, 1:2]
    o_ref[...] = (
        jnp.dot(out_w_ref[...], hn, preferred_element_type=jnp.float32)
        + out_b_ref[...]
    )


def run_fused_tcn(feats_padded, p, ksz, n_out):
    """feats_padded: (N, in_chan, T_pad) float32, T_pad a multiple of 128."""
    N, C, T_pad = feats_padded.shape
    bn = p["fr_w"].shape[0]
    nblk, hid, _ = p["w1_all"].shape

    kern = functools.partial(fused_tcn_kernel, dilations=p["dilations"], ksz=ksz)

    def full(shape):
        return pl.BlockSpec(shape, lambda n, _nd=len(shape): (0,) * _nd)

    return pl.pallas_call(
        kern,
        out_shape=jax.ShapeDtypeStruct((N, n_out, T_pad), jnp.float32),
        grid=(N,),
        in_specs=[
            pl.BlockSpec((None, C, T_pad), lambda n: (n, 0, 0)),   # activations
            full((C, 2)),                                          # front cLN
            full((bn, C)), full((bn, 1)),                          # front 1x1
            full((nblk, hid, bn)),                                 # w1 stacked
            full((nblk, hid, 2)),                                  # [b1, db']
            full((nblk, hid, ksz)),                                # dw' (BN1 folded)
            full((nblk, bn, hid)),                                 # wr' (BN2 folded)
            full((nblk, bn, 1)),                                   # br'
            full((bn, 2)),                                         # out cLN
            full((n_out, bn)), full((n_out, 1)),                   # out 1x1
            pl.BlockSpec(memory_space=pltpu.SMEM),                 # PReLU alphas
        ],
        out_specs=pl.BlockSpec((None, n_out, T_pad), lambda n: (n, 0, 0)),
        compiler_params=pltpu.CompilerParams(dimension_semantics=("parallel",)),
    )(feats_padded, p["fr_gb"], p["fr_w"], p["fr_b"],
      p["w1_all"], p["bcol_all"], p["dw_all"], p["wr_all"], p["br_all"],
      p["out_gb"], p["out_w"], p["out_b"], p["alphas"])


# ----------------------------------------------------------------------------
# torchaudio.transforms.MelSpectrogram equivalent (plain-JAX glue)
# torchaudio defaults: hann(periodic) window, win_length=n_fft, center=True,
# pad_mode='reflect', power=2.0, mel_scale='htk', norm=None.
# ----------------------------------------------------------------------------
def _hz_to_mel(f):
    return 2595.0 * jnp.log10(1.0 + f / 700.0)


def _mel_to_hz(m):
    return 700.0 * (jnp.power(10.0, m / 2595.0) - 1.0)


def mel_filterbank(n_freqs, n_mels, sample_rate, f_min=0.0, f_max=None):
    f_max = sample_rate / 2.0 if f_max is None else f_max
    all_freqs = jnp.linspace(0.0, sample_rate / 2.0, n_freqs)
    m_pts = jnp.linspace(_hz_to_mel(jnp.float32(f_min)),
                         _hz_to_mel(jnp.float32(f_max)), n_mels + 2)
    f_pts = _mel_to_hz(m_pts)
    f_diff = f_pts[1:] - f_pts[:-1]
    slopes = f_pts[None, :] - all_freqs[:, None]
    down = -slopes[:, :-2] / f_diff[:-1]
    up = slopes[:, 2:] / f_diff[1:]
    return jnp.maximum(0.0, jnp.minimum(down, up))        # (n_freqs, n_mels)


def mel_spectrogram(x, *, sample_rate, n_fft, hop_length, n_mels):
    pad = n_fft // 2
    xp = jnp.pad(x, ((0, 0), (pad, pad)), mode="reflect")
    n = jnp.arange(n_fft, dtype=jnp.float32)
    window = 0.5 - 0.5 * jnp.cos(2.0 * jnp.pi * n / n_fft)
    n_frames = 1 + (xp.shape[-1] - n_fft) // hop_length
    idx = jnp.arange(n_frames)[:, None] * hop_length + jnp.arange(n_fft)[None, :]
    frames = xp[:, idx] * window                          # (N, frames, n_fft)
    spec = jnp.abs(jnp.fft.rfft(frames, axis=-1)) ** 2    # power=2.0
    fb = mel_filterbank(n_fft // 2 + 1, n_mels, sample_rate)
    return jnp.einsum("ntf,fm->nmt", spec, fb)            # (N, n_mels, frames)


# ----------------------------------------------------------------------------
# Parameter init (deterministic, synthetic), BN folding, and full TCN forward
# ----------------------------------------------------------------------------
def init_tcn_params(key, in_chan, bn_chan, hid_chan, n_out, n_repeats, n_blocks, ksz):
    keys = iter(jax.random.split(key, 512))

    def nrm(shape, scale=0.1):
        return (scale * jax.random.normal(next(keys), shape)).astype(jnp.float32)

    def bn_eval_affine(c):
        # BatchNorm1d eval: y = (x - rm)/sqrt(rv+eps)*w + b  ->  y = x*scale + shift
        w = 1.0 + nrm((c, 1))
        bias = nrm((c, 1))
        rm = nrm((c, 1))
        rv = 1.0 + jnp.abs(nrm((c, 1)))
        scale = w / jnp.sqrt(rv + BN_EPS)
        return scale, bias - rm * scale

    params = {
        "front": dict(gamma=1.0 + nrm((in_chan, 1)), beta=nrm((in_chan, 1)),
                      w=nrm((bn_chan, in_chan)), b=nrm((bn_chan, 1))),
        "blocks": [],
        "out": None,
    }
    for _ in range(n_repeats):
        for b in range(n_blocks):
            s1, t1 = bn_eval_affine(hid_chan)
            s2, t2 = bn_eval_affine(hid_chan)
            params["blocks"].append(dict(
                w1=nrm((hid_chan, bn_chan)), b1=nrm((hid_chan, 1)),
                s1=s1, t1=t1,
                dw=nrm((hid_chan, ksz)), db=nrm((hid_chan, 1)),
                s2=s2, t2=t2,
                wr=nrm((bn_chan, hid_chan)), br=nrm((bn_chan, 1)),
                alphas=jnp.array([0.25, 0.25], jnp.float32),   # nn.PReLU default
                dilation=2 ** b,
            ))
    params["out"] = dict(alpha=jnp.array([0.25], jnp.float32),
                         gamma=1.0 + nrm((bn_chan, 1)), beta=nrm((bn_chan, 1)),
                         w=nrm((n_out, bn_chan)), b=nrm((n_out, 1)))
    return params


def prepare_fused_params(params):
    """Fold eval-mode BN affines into the following linear ops and stack blocks."""
    blocks = params["blocks"]
    # in_conv weights/biases (BN cannot be folded into them: PReLU follows).
    w1_all = jnp.stack([b["w1"] for b in blocks])                         # (nblk,hid,bn)
    b1_all = jnp.stack([b["b1"] for b in blocks])                         # (nblk,hid,1)
    # Fold BN1 (s1,t1) into the depthwise conv (which follows it).
    dw_all = jnp.stack([b["dw"] * b["s1"] for b in blocks])               # (nblk,hid,ksz)
    db_all = jnp.stack(
        [b["db"] + b["t1"] * jnp.sum(b["dw"], axis=1, keepdims=True) for b in blocks])
    bcol_all = jnp.concatenate([b1_all, db_all], axis=-1)                 # (nblk,hid,2)
    # Fold BN2 (s2,t2) into the residual 1x1 conv (which follows it).
    wr_all = jnp.stack([b["wr"] * b["s2"].T for b in blocks])             # (nblk,bn,hid)
    br_all = jnp.stack([b["br"] + b["wr"] @ b["t2"] for b in blocks])     # (nblk,bn,1)
    alphas = jnp.concatenate(
        [jnp.stack([b["alphas"] for b in blocks]).reshape(-1), params["out"]["alpha"]])
    fr, ou = params["front"], params["out"]
    return dict(
        fr_gb=jnp.concatenate([fr["gamma"], fr["beta"]], axis=-1),
        fr_w=fr["w"], fr_b=fr["b"],
        w1_all=w1_all, bcol_all=bcol_all, dw_all=dw_all,
        wr_all=wr_all, br_all=br_all,
        out_gb=jnp.concatenate([ou["gamma"], ou["beta"]], axis=-1),
        out_w=ou["w"], out_b=ou["b"],
        alphas=alphas,
        dilations=tuple(int(b["dilation"]) for b in blocks),
    )


def tcn_forward(fused, inputs, feats_config, n_out, ksz):
    bsz, spk, _ = inputs.shape
    inputs_flat = inputs.reshape(bsz * spk, -1)
    mel = mel_spectrogram(inputs_flat, **feats_config)
    feats = 10.0 * jnp.log10(mel + 1e-8)                  # (bsz*spk, n_mels, T)
    if n_out == 2:
        n_mels = feats.shape[1]
        feats = feats.reshape(bsz, spk * n_mels, -1)

    N, C, T = feats.shape
    t_out = T - sum(d * (ksz - 1) for d in fused["dilations"])
    # Pad time to a lane-dense width (multiple of 128); valid data is
    # left-aligned, so the padded tail never contaminates the valid region.
    T_pad = max(128, ((T + 127) // 128) * 128)
    feats_p = jnp.pad(feats.astype(jnp.float32), ((0, 0), (0, 0), (0, T_pad - T)))

    logits_full = run_fused_tcn(feats_p, fused, ksz, n_out)   # (N, n_out, T_pad)
    logits = logits_full[:, :, :t_out]
    if n_out == 1:
        logits = logits.reshape(bsz, spk, -1)
    return logits


# ----------------------------------------------------------------------------
if __name__ == "__main__":
    # Small config consistent with TCN.__init__
    feats_config = dict(sample_rate=1600, n_fft=64, hop_length=16, n_mels=16)
    n_out = 1
    use_input_mix = False
    bn_chan, hid_chan = 16, 32
    n_repeats, n_blocks, ksz = 2, 3, 3
    in_chan = feats_config["n_mels"] * (n_out + int(use_input_mix))

    key = jax.random.PRNGKey(0)
    k_param, k_in = jax.random.split(key)
    params = init_tcn_params(k_param, in_chan, bn_chan, hid_chan,
                             n_out, n_repeats, n_blocks, ksz)
    fused = prepare_fused_params(params)

    bsz, spk, n_samples = 2, 2, 1024
    inputs = jax.random.normal(k_in, (bsz, spk, n_samples), dtype=jnp.float32)

    # TODO(synk): SpecAugment masking in NormSpecAugment is training-only; eval
    # semantics (norm only) are implemented here.
    logits = tcn_forward(fused, inputs, feats_config, n_out, ksz)
    logits = jax.block_until_ready(logits)

    # Expected time shrink: n_repeats * sum_b dilation*(ksz-1)
    t_in = 1 + n_samples // feats_config["hop_length"]
    t_out = t_in - n_repeats * sum((2 ** b) * (ksz - 1) for b in range(n_blocks))
    assert logits.shape == (bsz, spk, t_out), logits.shape
    assert bool(jnp.all(jnp.isfinite(logits)))
    print("KERNEL_OK")
</pallas_src>

<mosaic_0001>
module attributes {stable_mosaic.version = 11 : i64} {
  func.func @fused_tcn_kernel(%arg0: i32, %arg1: memref<1x16x128xf32, #tpu.memory_space<vmem>>, %arg2: memref<16x2xf32, #tpu.memory_space<vmem>>, %arg3: memref<16x16xf32, #tpu.memory_space<vmem>>, %arg4: memref<16x1xf32, #tpu.memory_space<vmem>>, %arg5: memref<6x32x16xf32, #tpu.memory_space<vmem>>, %arg6: memref<6x32x2xf32, #tpu.memory_space<vmem>>, %arg7: memref<6x32x3xf32, #tpu.memory_space<vmem>>, %arg8: memref<6x16x32xf32, #tpu.memory_space<vmem>>, %arg9: memref<6x16x1xf32, #tpu.memory_space<vmem>>, %arg10: memref<16x2xf32, #tpu.memory_space<vmem>>, %arg11: memref<1x16xf32, #tpu.memory_space<vmem>>, %arg12: memref<1x1xf32, #tpu.memory_space<vmem>>, %arg13: memref<13xf32, #tpu.memory_space<smem>>, %arg14: memref<1x1x128xf32, #tpu.memory_space<vmem>>) attributes {dimension_semantics = [#tpu.dimension_semantics<parallel>], iteration_bounds = array<i64: 4>, scalar_prefetch = 0 : i64, scratch_operands = 0 : i64, tpu.core_type = #tpu.core_type<tc>, window_params = [{transform_indices = @transform_0, window_bounds = array<i64: 1, 16, 128>}, {pipeline_mode = #tpu.pipeline_mode<synchronous>, transform_indices = @transform_1, window_bounds = array<i64: 16, 2>}, {pipeline_mode = #tpu.pipeline_mode<synchronous>, transform_indices = @transform_2, window_bounds = array<i64: 16, 16>}, {pipeline_mode = #tpu.pipeline_mode<synchronous>, transform_indices = @transform_3, window_bounds = array<i64: 16, 1>}, {pipeline_mode = #tpu.pipeline_mode<synchronous>, transform_indices = @transform_4, window_bounds = array<i64: 6, 32, 16>}, {pipeline_mode = #tpu.pipeline_mode<synchronous>, transform_indices = @transform_5, window_bounds = array<i64: 6, 32, 2>}, {pipeline_mode = #tpu.pipeline_mode<synchronous>, transform_indices = @transform_6, window_bounds = array<i64: 6, 32, 3>}, {pipeline_mode = #tpu.pipeline_mode<synchronous>, transform_indices = @transform_7, window_bounds = array<i64: 6, 16, 32>}, {pipeline_mode = #tpu.pipeline_mode<synchronous>, transform_indices = @transform_8, window_bounds = array<i64: 6, 16, 1>}, {pipeline_mode = #tpu.pipeline_mode<synchronous>, transform_indices = @transform_9, window_bounds = array<i64: 16, 2>}, {pipeline_mode = #tpu.pipeline_mode<synchronous>, transform_indices = @transform_10, window_bounds = array<i64: 1, 16>}, {pipeline_mode = #tpu.pipeline_mode<synchronous>, transform_indices = @transform_11, window_bounds = array<i64: 1, 1>}, {transform_indices = @transform_12, window_bounds = array<i64: 13>}, {transform_indices = @transform_13, window_bounds = array<i64: 1, 1, 128>}]} {
    %c0 = arith.constant 0 : index
    %c0_0 = arith.constant 0 : index
    %c0_1 = arith.constant 0 : index
    %0 = vector.load %arg1[%c0, %c0_0, %c0_1] : memref<1x16x128xf32, #tpu.memory_space<vmem>>, vector<1x16x128xf32>
    %1 = vector.shape_cast %0 : vector<1x16x128xf32> to vector<16x128xf32>
    %cst = arith.constant dense<0.000000e+00> : vector<128xf32>
    %2 = vector.multi_reduction <add>, %1, %cst [0] : vector<16x128xf32> to vector<128xf32>
    %3 = vector.shape_cast %2 : vector<128xf32> to vector<1x128xf32>
    %cst_2 = arith.constant 1.600000e+01 : f32
    %4 = vector.broadcast %cst_2 : f32 to vector<1x128xf32>
    %5 = arith.divf %3, %4 : vector<1x128xf32>
    %6 = vector.broadcast %5 : vector<1x128xf32> to vector<16x128xf32>
    %7 = arith.subf %1, %6 : vector<16x128xf32>
    %8 = arith.mulf %7, %7 : vector<16x128xf32>
    %cst_3 = arith.constant dense<0.000000e+00> : vector<128xf32>
    %9 = vector.multi_reduction <add>, %8, %cst_3 [0] : vector<16x128xf32> to vector<128xf32>
    %10 = vector.shape_cast %9 : vector<128xf32> to vector<1x128xf32>
    %cst_4 = arith.constant 1.600000e+01 : f32
    %11 = vector.broadcast %cst_4 : f32 to vector<1x128xf32>
    %12 = arith.divf %10, %11 : vector<1x128xf32>
    %13 = vector.broadcast %5 : vector<1x128xf32> to vector<16x128xf32>
    %14 = arith.subf %1, %13 : vector<16x128xf32>
    %cst_5 = arith.constant 9.99999993E-9 : f32
    %15 = vector.broadcast %cst_5 : f32 to vector<1x128xf32>
    %16 = arith.addf %12, %15 : vector<1x128xf32>
    %17 = math.rsqrt %16 : vector<1x128xf32>
    %18 = vector.broadcast %17 : vector<1x128xf32> to vector<16x128xf32>
    %19 = arith.mulf %14, %18 : vector<16x128xf32>
    %c0_6 = arith.constant 0 : index
    %c0_7 = arith.constant 0 : index
    %20 = vector.load %arg2[%c0_6, %c0_7] : memref<16x2xf32, #tpu.memory_space<vmem>>, vector<16x2xf32>
    %21 = vector.extract_strided_slice %20 {offsets = [0, 0], sizes = [16, 1], strides = [1, 1]} : vector<16x2xf32> to vector<16x1xf32>
    %22 = vector.broadcast %21 : vector<16x1xf32> to vector<16x128xf32>
    %23 = arith.mulf %19, %22 : vector<16x128xf32>
    %24 = vector.extract_strided_slice %20 {offsets = [0, 1], sizes = [16, 1], strides = [1, 1]} : vector<16x2xf32> to vector<16x1xf32>
    %25 = vector.broadcast %24 : vector<16x1xf32> to vector<16x128xf32>
    %26 = arith.addf %23, %25 : vector<16x128xf32>
    %c0_8 = arith.constant 0 : index
    %c0_9 = arith.constant 0 : index
    %27 = vector.load %arg3[%c0_8, %c0_9] : memref<16x16xf32, #tpu.memory_space<vmem>>, vector<16x16xf32>
    %cst_10 = arith.constant dense<0.000000e+00> : vector<16x128xf32>
    %28 = tpu.matmul %27, %26, %cst_10 {dimension_numbers = #tpu.dot_dimension_numbers<[1], [0], [0], [1], [0, 0, 1, 1], [], []>} : vector<16x16xf32>, vector<16x128xf32>, vector<16x128xf32> -> vector<16x128xf32>
    %c0_11 = arith.constant 0 : index
    %c0_12 = arith.constant 0 : index
    %29 = vector.load %arg4[%c0_11, %c0_12] : memref<16x1xf32, #tpu.memory_space<vmem>>, vector<16x1xf32>
    %30 = vector.broadcast %29 : vector<16x1xf32> to vector<16x128xf32>
    %31 = arith.addf %28, %30 : vector<16x128xf32>
    %c0_13 = arith.constant 0 : index
    %c0_14 = arith.constant 0 : index
    %c0_15 = arith.constant 0 : index
    %32 = vector.load %arg5[%c0_13, %c0_14, %c0_15] : memref<6x32x16xf32, #tpu.memory_space<vmem>>, vector<6x32x16xf32>
    %c0_16 = arith.constant 0 : index
    %c0_17 = arith.constant 0 : index
    %c0_18 = arith.constant 0 : index
    %33 = vector.load %arg6[%c0_16, %c0_17, %c0_18] : memref<6x32x2xf32, #tpu.memory_space<vmem>>, vector<6x32x2xf32>
    %c0_19 = arith.constant 0 : index
    %c0_20 = arith.constant 0 : index
    %c0_21 = arith.constant 0 : index
    %34 = vector.load %arg7[%c0_19, %c0_20, %c0_21] : memref<6x32x3xf32, #tpu.memory_space<vmem>>, vector<6x32x3xf32>
    %c0_22 = arith.constant 0 : index
    %c0_23 = arith.constant 0 : index
    %c0_24 = arith.constant 0 : index
    %35 = vector.load %arg8[%c0_22, %c0_23, %c0_24] : memref<6x16x32xf32, #tpu.memory_space<vmem>>, vector<6x16x32xf32>
    %c0_25 = arith.constant 0 : index
    %c0_26 = arith.constant 0 : index
    %c0_27 = arith.constant 0 : index
    %36 = vector.load %arg9[%c0_25, %c0_26, %c0_27] : memref<6x16x1xf32, #tpu.memory_space<vmem>>, vector<6x16x1xf32>
    %37 = vector.extract_strided_slice %32 {offsets = [0, 0, 0], sizes = [1, 32, 16], strides = [1, 1, 1]} : vector<6x32x16xf32> to vector<1x32x16xf32>
    %38 = vector.shape_cast %37 : vector<1x32x16xf32> to vector<32x16xf32>
    %39 = vector.extract_strided_slice %33 {offsets = [0, 0, 0], sizes = [1, 32, 2], strides = [1, 1, 1]} : vector<6x32x2xf32> to vector<1x32x2xf32>
    %40 = vector.shape_cast %39 : vector<1x32x2xf32> to vector<32x2xf32>
    %41 = vector.extract_strided_slice %40 {offsets = [0, 0], sizes = [32, 1], strides = [1, 1]} : vector<32x2xf32> to vector<32x1xf32>
    %42 = vector.extract_strided_slice %40 {offsets = [0, 1], sizes = [32, 1], strides = [1, 1]} : vector<32x2xf32> to vector<32x1xf32>
    %43 = vector.extract_strided_slice %34 {offsets = [0, 0, 0], sizes = [1, 32, 3], strides = [1, 1, 1]} : vector<6x32x3xf32> to vector<1x32x3xf32>
    %44 = vector.shape_cast %43 : vector<1x32x3xf32> to vector<32x3xf32>
    %45 = vector.extract_strided_slice %35 {offsets = [0, 0, 0], sizes = [1, 16, 32], strides = [1, 1, 1]} : vector<6x16x32xf32> to vector<1x16x32xf32>
    %46 = vector.shape_cast %45 : vector<1x16x32xf32> to vector<16x32xf32>
    %47 = vector.extract_strided_slice %36 {offsets = [0, 0, 0], sizes = [1, 16, 1], strides = [1, 1, 1]} : vector<6x16x1xf32> to vector<1x16x1xf32>
    %48 = vector.shape_cast %47 : vector<1x16x1xf32> to vector<16x1xf32>
    %c0_28 = arith.constant 0 : index
    %49 = memref.load %arg13[%c0_28] : memref<13xf32, #tpu.memory_space<smem>>
    %c1 = arith.constant 1 : index
    %50 = memref.load %arg13[%c1] : memref<13xf32, #tpu.memory_space<smem>>
    %cst_29 = arith.constant dense<0.000000e+00> : vector<32x128xf32>
    %51 = tpu.matmul %38, %31, %cst_29 {dimension_numbers = #tpu.dot_dimension_numbers<[1], [0], [0], [1], [0, 0, 1, 1], [], []>} : vector<32x16xf32>, vector<16x128xf32>, vector<32x128xf32> -> vector<32x128xf32>
    %52 = vector.broadcast %41 : vector<32x1xf32> to vector<32x128xf32>
    %53 = arith.addf %51, %52 : vector<32x128xf32>
    %cst_30 = arith.constant 0.000000e+00 : f32
    %54 = vector.broadcast %cst_30 : f32 to vector<32x128xf32>
    %55 = arith.cmpf oge, %53, %54 : vector<32x128xf32>
    %56 = vector.broadcast %49 : f32 to vector<32x128xf32>
    %57 = arith.mulf %56, %53 : vector<32x128xf32>
    %58 = arith.select %55, %53, %57 : vector<32x128xi1>, vector<32x128xf32>
    %59 = vector.extract_strided_slice %44 {offsets = [0, 0], sizes = [32, 1], strides = [1, 1]} : vector<32x3xf32> to vector<32x1xf32>
    %60 = vector.broadcast %59 : vector<32x1xf32> to vector<32x128xf32>
    %61 = arith.mulf %60, %58 : vector<32x128xf32>
    %62 = vector.broadcast %42 : vector<32x1xf32> to vector<32x128xf32>
    %63 = arith.addf %61, %62 : vector<32x128xf32>
    %c127_i32 = arith.constant 127 : i32
    %64 = tpu.dynamic_rotate %58 by %c127_i32 dim 1 : vector<32x128xf32>, i32 -> vector<32x128xf32>
    %65 = vector.extract_strided_slice %44 {offsets = [0, 1], sizes = [32, 1], strides = [1, 1]} : vector<32x3xf32> to vector<32x1xf32>
    %66 = vector.broadcast %65 : vector<32x1xf32> to vector<32x128xf32>
    %67 = arith.mulf %66, %64 : vector<32x128xf32>
    %68 = arith.addf %63, %67 : vector<32x128xf32>
    %c126_i32 = arith.constant 126 : i32
    %69 = tpu.dynamic_rotate %58 by %c126_i32 dim 1 : vector<32x128xf32>, i32 -> vector<32x128xf32>
    %70 = vector.extract_strided_slice %44 {offsets = [0, 2], sizes = [32, 1], strides = [1, 1]} : vector<32x3xf32> to vector<32x1xf32>
    %71 = vector.broadcast %70 : vector<32x1xf32> to vector<32x128xf32>
    %72 = arith.mulf %71, %69 : vector<32x128xf32>
    %73 = arith.addf %68, %72 : vector<32x128xf32>
    %cst_31 = arith.constant 0.000000e+00 : f32
    %74 = vector.broadcast %cst_31 : f32 to vector<32x128xf32>
    %75 = arith.cmpf oge, %73, %74 : vector<32x128xf32>
    %76 = vector.broadcast %50 : f32 to vector<32x128xf32>
    %77 = arith.mulf %76, %73 : vector<32x128xf32>
    %78 = arith.select %75, %73, %77 : vector<32x128xi1>, vector<32x128xf32>
    %cst_32 = arith.constant dense<0.000000e+00> : vector<16x128xf32>
    %79 = tpu.matmul %46, %78, %cst_32 {dimension_numbers = #tpu.dot_dimension_numbers<[1], [0], [0], [1], [0, 0, 1, 1], [], []>} : vector<16x32xf32>, vector<32x128xf32>, vector<16x128xf32> -> vector<16x128xf32>
    %80 = vector.broadcast %48 : vector<16x1xf32> to vector<16x128xf32>
    %81 = arith.addf %79, %80 : vector<16x128xf32>
    %82 = arith.addf %31, %81 : vector<16x128xf32>
    %83 = vector.extract_strided_slice %32 {offsets = [1, 0, 0], sizes = [1, 32, 16], strides = [1, 1, 1]} : vector<6x32x16xf32> to vector<1x32x16xf32>
    %84 = vector.shape_cast %83 : vector<1x32x16xf32> to vector<32x16xf32>
    %85 = vector.extract_strided_slice %33 {offsets = [1, 0, 0], sizes = [1, 32, 2], strides = [1, 1, 1]} : vector<6x32x2xf32> to vector<1x32x2xf32>
    %86 = vector.shape_cast %85 : vector<1x32x2xf32> to vector<32x2xf32>
    %87 = vector.extract_strided_slice %86 {offsets = [0, 0], sizes = [32, 1], strides = [1, 1]} : vector<32x2xf32> to vector<32x1xf32>
    %88 = vector.extract_strided_slice %86 {offsets = [0, 1], sizes = [32, 1], strides = [1, 1]} : vector<32x2xf32> to vector<32x1xf32>
    %89 = vector.extract_strided_slice %34 {offsets = [1, 0, 0], sizes = [1, 32, 3], strides = [1, 1, 1]} : vector<6x32x3xf32> to vector<1x32x3xf32>
    %90 = vector.shape_cast %89 : vector<1x32x3xf32> to vector<32x3xf32>
    %91 = vector.extract_strided_slice %35 {offsets = [1, 0, 0], sizes = [1, 16, 32], strides = [1, 1, 1]} : vector<6x16x32xf32> to vector<1x16x32xf32>
    %92 = vector.shape_cast %91 : vector<1x16x32xf32> to vector<16x32xf32>
    %93 = vector.extract_strided_slice %36 {offsets = [1, 0, 0], sizes = [1, 16, 1], strides = [1, 1, 1]} : vector<6x16x1xf32> to vector<1x16x1xf32>
    %94 = vector.shape_cast %93 : vector<1x16x1xf32> to vector<16x1xf32>
    %c2 = arith.constant 2 : index
    %95 = memref.load %arg13[%c2] : memref<13xf32, #tpu.memory_space<smem>>
    %c3 = arith.constant 3 : index
    %96 = memref.load %arg13[%c3] : memref<13xf32, #tpu.memory_space<smem>>
    %cst_33 = arith.constant dense<0.000000e+00> : vector<32x128xf32>
    %97 = tpu.matmul %84, %82, %cst_33 {dimension_numbers = #tpu.dot_dimension_numbers<[1], [0], [0], [1], [0, 0, 1, 1], [], []>} : vector<32x16xf32>, vector<16x128xf32>, vector<32x128xf32> -> vector<32x128xf32>
    %98 = vector.broadcast %87 : vector<32x1xf32> to vector<32x128xf32>
    %99 = arith.addf %97, %98 : vector<32x128xf32>
    %cst_34 = arith.constant 0.000000e+00 : f32
    %100 = vector.broadcast %cst_34 : f32 to vector<32x128xf32>
    %101 = arith.cmpf oge, %99, %100 : vector<32x128xf32>
    %102 = vector.broadcast %95 : f32 to vector<32x128xf32>
    %103 = arith.mulf %102, %99 : vector<32x128xf32>
    %104 = arith.select %101, %99, %103 : vector<32x128xi1>, vector<32x128xf32>
    %105 = vector.extract_strided_slice %90 {offsets = [0, 0], sizes = [32, 1], strides = [1, 1]} : vector<32x3xf32> to vector<32x1xf32>
    %106 = vector.broadcast %105 : vector<32x1xf32> to vector<32x128xf32>
    %107 = arith.mulf %106, %104 : vector<32x128xf32>
    %108 = vector.broadcast %88 : vector<32x1xf32> to vector<32x128xf32>
    %109 = arith.addf %107, %108 : vector<32x128xf32>
    %c126_i32_35 = arith.constant 126 : i32
    %110 = tpu.dynamic_rotate %104 by %c126_i32_35 dim 1 : vector<32x128xf32>, i32 -> vector<32x128xf32>
    %111 = vector.extract_strided_slice %90 {offsets = [0, 1], sizes = [32, 1], strides = [1, 1]} : vector<32x3xf32> to vector<32x1xf32>
    %112 = vector.broadcast %111 : vector<32x1xf32> to vector<32x128xf32>
    %113 = arith.mulf %112, %110 : vector<32x128xf32>
    %114 = arith.addf %109, %113 : vector<32x128xf32>
    %c124_i32 = arith.constant 124 : i32
    %115 = tpu.dynamic_rotate %104 by %c124_i32 dim 1 : vector<32x128xf32>, i32 -> vector<32x128xf32>
    %116 = vector.extract_strided_slice %90 {offsets = [0, 2], sizes = [32, 1], strides = [1, 1]} : vector<32x3xf32> to vector<32x1xf32>
    %117 = vector.broadcast %116 : vector<32x1xf32> to vector<32x128xf32>
    %118 = arith.mulf %117, %115 : vector<32x128xf32>
    %119 = arith.addf %114, %118 : vector<32x128xf32>
    %cst_36 = arith.constant 0.000000e+00 : f32
    %120 = vector.broadcast %cst_36 : f32 to vector<32x128xf32>
    %121 = arith.cmpf oge, %119, %120 : vector<32x128xf32>
    %122 = vector.broadcast %96 : f32 to vector<32x128xf32>
    %123 = arith.mulf %122, %119 : vector<32x128xf32>
    %124 = arith.select %121, %119, %123 : vector<32x128xi1>, vector<32x128xf32>
    %cst_37 = arith.constant dense<0.000000e+00> : vector<16x128xf32>
    %125 = tpu.matmul %92, %124, %cst_37 {dimension_numbers = #tpu.dot_dimension_numbers<[1], [0], [0], [1], [0, 0, 1, 1], [], []>} : vector<16x32xf32>, vector<32x128xf32>, vector<16x128xf32> -> vector<16x128xf32>
    %126 = vector.broadcast %94 : vector<16x1xf32> to vector<16x128xf32>
    %127 = arith.addf %125, %126 : vector<16x128xf32>
    %128 = arith.addf %82, %127 : vector<16x128xf32>
    %129 = vector.extract_strided_slice %32 {offsets = [2, 0, 0], sizes = [1, 32, 16], strides = [1, 1, 1]} : vector<6x32x16xf32> to vector<1x32x16xf32>
    %130 = vector.shape_cast %129 : vector<1x32x16xf32> to vector<32x16xf32>
    %131 = vector.extract_strided_slice %33 {offsets = [2, 0, 0], sizes = [1, 32, 2], strides = [1, 1, 1]} : vector<6x32x2xf32> to vector<1x32x2xf32>
    %132 = vector.shape_cast %131 : vector<1x32x2xf32> to vector<32x2xf32>
    %133 = vector.extract_strided_slice %132 {offsets = [0, 0], sizes = [32, 1], strides = [1, 1]} : vector<32x2xf32> to vector<32x1xf32>
    %134 = vector.extract_strided_slice %132 {offsets = [0, 1], sizes = [32, 1], strides = [1, 1]} : vector<32x2xf32> to vector<32x1xf32>
    %135 = vector.extract_strided_slice %34 {offsets = [2, 0, 0], sizes = [1, 32, 3], strides = [1, 1, 1]} : vector<6x32x3xf32> to vector<1x32x3xf32>
    %136 = vector.shape_cast %135 : vector<1x32x3xf32> to vector<32x3xf32>
    %137 = vector.extract_strided_slice %35 {offsets = [2, 0, 0], sizes = [1, 16, 32], strides = [1, 1, 1]} : vector<6x16x32xf32> to vector<1x16x32xf32>
    %138 = vector.shape_cast %137 : vector<1x16x32xf32> to vector<16x32xf32>
    %139 = vector.extract_strided_slice %36 {offsets = [2, 0, 0], sizes = [1, 16, 1], strides = [1, 1, 1]} : vector<6x16x1xf32> to vector<1x16x1xf32>
    %140 = vector.shape_cast %139 : vector<1x16x1xf32> to vector<16x1xf32>
    %c4 = arith.constant 4 : index
    %141 = memref.load %arg13[%c4] : memref<13xf32, #tpu.memory_space<smem>>
    %c5 = arith.constant 5 : index
    %142 = memref.load %arg13[%c5] : memref<13xf32, #tpu.memory_space<smem>>
    %cst_38 = arith.constant dense<0.000000e+00> : vector<32x128xf32>
    %143 = tpu.matmul %130, %128, %cst_38 {dimension_numbers = #tpu.dot_dimension_numbers<[1], [0], [0], [1], [0, 0, 1, 1], [], []>} : vector<32x16xf32>, vector<16x128xf32>, vector<32x128xf32> -> vector<32x128xf32>
    %144 = vector.broadcast %133 : vector<32x1xf32> to vector<32x128xf32>
    %145 = arith.addf %143, %144 : vector<32x128xf32>
    %cst_39 = arith.constant 0.000000e+00 : f32
    %146 = vector.broadcast %cst_39 : f32 to vector<32x128xf32>
    %147 = arith.cmpf oge, %145, %146 : vector<32x128xf32>
    %148 = vector.broadcast %141 : f32 to vector<32x128xf32>
    %149 = arith.mulf %148, %145 : vector<32x128xf32>
    %150 = arith.select %147, %145, %149 : vector<32x128xi1>, vector<32x128xf32>
    %151 = vector.extract_strided_slice %136 {offsets = [0, 0], sizes = [32, 1], strides = [1, 1]} : vector<32x3xf32> to vector<32x1xf32>
    %152 = vector.broadcast %151 : vector<32x1xf32> to vector<32x128xf32>
    %153 = arith.mulf %152, %150 : vector<32x128xf32>
    %154 = vector.broadcast %134 : vector<32x1xf32> to vector<32x128xf32>
    %155 = arith.addf %153, %154 : vector<32x128xf32>
    %c124_i32_40 = arith.constant 124 : i32
    %156 = tpu.dynamic_rotate %150 by %c124_i32_40 dim 1 : vector<32x128xf32>, i32 -> vector<32x128xf32>
    %157 = vector.extract_strided_slice %136 {offsets = [0, 1], sizes = [32, 1], strides = [1, 1]} : vector<32x3xf32> to vector<32x1xf32>
    %158 = vector.broadcast %157 : vector<32x1xf32> to vector<32x128xf32>
    %159 = arith.mulf %158, %156 : vector<32x128xf32>
    %160 = arith.addf %155, %159 : vector<32x128xf32>
    %c120_i32 = arith.constant 120 : i32
    %161 = tpu.dynamic_rotate %150 by %c120_i32 dim 1 : vector<32x128xf32>, i32 -> vector<32x128xf32>
    %162 = vector.extract_strided_slice %136 {offsets = [0, 2], sizes = [32, 1], strides = [1, 1]} : vector<32x3xf32> to vector<32x1xf32>
    %163 = vector.broadcast %162 : vector<32x1xf32> to vector<32x128xf32>
    %164 = arith.mulf %163, %161 : vector<32x128xf32>
    %165 = arith.addf %160, %164 : vector<32x128xf32>
    %cst_41 = arith.constant 0.000000e+00 : f32
    %166 = vector.broadcast %cst_41 : f32 to vector<32x128xf32>
    %167 = arith.cmpf oge, %165, %166 : vector<32x128xf32>
    %168 = vector.broadcast %142 : f32 to vector<32x128xf32>
    %169 = arith.mulf %168, %165 : vector<32x128xf32>
    %170 = arith.select %167, %165, %169 : vector<32x128xi1>, vector<32x128xf32>
    %cst_42 = arith.constant dense<0.000000e+00> : vector<16x128xf32>
    %171 = tpu.matmul %138, %170, %cst_42 {dimension_numbers = #tpu.dot_dimension_numbers<[1], [0], [0], [1], [0, 0, 1, 1], [], []>} : vector<16x32xf32>, vector<32x128xf32>, vector<16x128xf32> -> vector<16x128xf32>
    %172 = vector.broadcast %140 : vector<16x1xf32> to vector<16x128xf32>
    %173 = arith.addf %171, %172 : vector<16x128xf32>
    %174 = arith.addf %128, %173 : vector<16x128xf32>
    %175 = vector.extract_strided_slice %32 {offsets = [3, 0, 0], sizes = [1, 32, 16], strides = [1, 1, 1]} : vector<6x32x16xf32> to vector<1x32x16xf32>
    %176 = vector.shape_cast %175 : vector<1x32x16xf32> to vector<32x16xf32>
    %177 = vector.extract_strided_slice %33 {offsets = [3, 0, 0], sizes = [1, 32, 2], strides = [1, 1, 1]} : vector<6x32x2xf32> to vector<1x32x2xf32>
    %178 = vector.shape_cast %177 : vector<1x32x2xf32> to vector<32x2xf32>
    %179 = vector.extract_strided_slice %178 {offsets = [0, 0], sizes = [32, 1], strides = [1, 1]} : vector<32x2xf32> to vector<32x1xf32>
    %180 = vector.extract_strided_slice %178 {offsets = [0, 1], sizes = [32, 1], strides = [1, 1]} : vector<32x2xf32> to vector<32x1xf32>
    %181 = vector.extract_strided_slice %34 {offsets = [3, 0, 0], sizes = [1, 32, 3], strides = [1, 1, 1]} : vector<6x32x3xf32> to vector<1x32x3xf32>
    %182 = vector.shape_cast %181 : vector<1x32x3xf32> to vector<32x3xf32>
    %183 = vector.extract_strided_slice %35 {offsets = [3, 0, 0], sizes = [1, 16, 32], strides = [1, 1, 1]} : vector<6x16x32xf32> to vector<1x16x32xf32>
    %184 = vector.shape_cast %183 : vector<1x16x32xf32> to vector<16x32xf32>
    %185 = vector.extract_strided_slice %36 {offsets = [3, 0, 0], sizes = [1, 16, 1], strides = [1, 1, 1]} : vector<6x16x1xf32> to vector<1x16x1xf32>
    %186 = vector.shape_cast %185 : vector<1x16x1xf32> to vector<16x1xf32>
    %c6 = arith.constant 6 : index
    %187 = memref.load %arg13[%c6] : memref<13xf32, #tpu.memory_space<smem>>
    %c7 = arith.constant 7 : index
    %188 = memref.load %arg13[%c7] : memref<13xf32, #tpu.memory_space<smem>>
    %cst_43 = arith.constant dense<0.000000e+00> : vector<32x128xf32>
    %189 = tpu.matmul %176, %174, %cst_43 {dimension_numbers = #tpu.dot_dimension_numbers<[1], [0], [0], [1], [0, 0, 1, 1], [], []>} : vector<32x16xf32>, vector<16x128xf32>, vector<32x128xf32> -> vector<32x128xf32>
    %190 = vector.broadcast %179 : vector<32x1xf32> to vector<32x128xf32>
    %191 = arith.addf %189, %190 : vector<32x128xf32>
    %cst_44 = arith.constant 0.000000e+00 : f32
    %192 = vector.broadcast %cst_44 : f32 to vector<32x128xf32>
    %193 = arith.cmpf oge, %191, %192 : vector<32x128xf32>
    %194 = vector.broadcast %187 : f32 to vector<32x128xf32>
    %195 = arith.mulf %194, %191 : vector<32x128xf32>
    %196 = arith.select %193, %191, %195 : vector<32x128xi1>, vector<32x128xf32>
    %197 = vector.extract_strided_slice %182 {offsets = [0, 0], sizes = [32, 1], strides = [1, 1]} : vector<32x3xf32> to vector<32x1xf32>
    %198 = vector.broadcast %197 : vector<32x1xf32> to vector<32x128xf32>
    %199 = arith.mulf %198, %196 : vector<32x128xf32>
    %200 = vector.broadcast %180 : vector<32x1xf32> to vector<32x128xf32>
    %201 = arith.addf %199, %200 : vector<32x128xf32>
    %c127_i32_45 = arith.constant 127 : i32
    %202 = tpu.dynamic_rotate %196 by %c127_i32_45 dim 1 : vector<32x128xf32>, i32 -> vector<32x128xf32>
    %203 = vector.extract_strided_slice %182 {offsets = [0, 1], sizes = [32, 1], strides = [1, 1]} : vector<32x3xf32> to vector<32x1xf32>
    %204 = vector.broadcast %203 : vector<32x1xf32> to vector<32x128xf32>
    %205 = arith.mulf %204, %202 : vector<32x128xf32>
    %206 = arith.addf %201, %205 : vector<32x128xf32>
    %c126_i32_46 = arith.constant 126 : i32
    %207 = tpu.dynamic_rotate %196 by %c126_i32_46 dim 1 : vector<32x128xf32>, i32 -> vector<32x128xf32>
    %208 = vector.extract_strided_slice %182 {offsets = [0, 2], sizes = [32, 1], strides = [1, 1]} : vector<32x3xf32> to vector<32x1xf32>
    %209 = vector.broadcast %208 : vector<32x1xf32> to vector<32x128xf32>
    %210 = arith.mulf %209, %207 : vector<32x128xf32>
    %211 = arith.addf %206, %210 : vector<32x128xf32>
    %cst_47 = arith.constant 0.000000e+00 : f32
    %212 = vector.broadcast %cst_47 : f32 to vector<32x128xf32>
    %213 = arith.cmpf oge, %211, %212 : vector<32x128xf32>
    %214 = vector.broadcast %188 : f32 to vector<32x128xf32>
    %215 = arith.mulf %214, %211 : vector<32x128xf32>
    %216 = arith.select %213, %211, %215 : vector<32x128xi1>, vector<32x128xf32>
    %cst_48 = arith.constant dense<0.000000e+00> : vector<16x128xf32>
    %217 = tpu.matmul %184, %216, %cst_48 {dimension_numbers = #tpu.dot_dimension_numbers<[1], [0], [0], [1], [0, 0, 1, 1], [], []>} : vector<16x32xf32>, vector<32x128xf32>, vector<16x128xf32> -> vector<16x128xf32>
    %218 = vector.broadcast %186 : vector<16x1xf32> to vector<16x128xf32>
    %219 = arith.addf %217, %218 : vector<16x128xf32>
    %220 = arith.addf %174, %219 : vector<16x128xf32>
    %221 = vector.extract_strided_slice %32 {offsets = [4, 0, 0], sizes = [1, 32, 16], strides = [1, 1, 1]} : vector<6x32x16xf32> to vector<1x32x16xf32>
    %222 = vector.shape_cast %221 : vector<1x32x16xf32> to vector<32x16xf32>
    %223 = vector.extract_strided_slice %33 {offsets = [4, 0, 0], sizes = [1, 32, 2], strides = [1, 1, 1]} : vector<6x32x2xf32> to vector<1x32x2xf32>
    %224 = vector.shape_cast %223 : vector<1x32x2xf32> to vector<32x2xf32>
    %225 = vector.extract_strided_slice %224 {offsets = [0, 0], sizes = [32, 1], strides = [1, 1]} : vector<32x2xf32> to vector<32x1xf32>
    %226 = vector.extract_strided_slice %224 {offsets = [0, 1], sizes = [32, 1], strides = [1, 1]} : vector<32x2xf32> to vector<32x1xf32>
    %227 = vector.extract_strided_slice %34 {offsets = [4, 0, 0], sizes = [1, 32, 3], strides = [1, 1, 1]} : vector<6x32x3xf32> to vector<1x32x3xf32>
    %228 = vector.shape_cast %227 : vector<1x32x3xf32> to vector<32x3xf32>
    %229 = vector.extract_strided_slice %35 {offsets = [4, 0, 0], sizes = [1, 16, 32], strides = [1, 1, 1]} : vector<6x16x32xf32> to vector<1x16x32xf32>
    %230 = vector.shape_cast %229 : vector<1x16x32xf32> to vector<16x32xf32>
    %231 = vector.extract_strided_slice %36 {offsets = [4, 0, 0], sizes = [1, 16, 1], strides = [1, 1, 1]} : vector<6x16x1xf32> to vector<1x16x1xf32>
    %232 = vector.shape_cast %231 : vector<1x16x1xf32> to vector<16x1xf32>
    %c8 = arith.constant 8 : index
    %233 = memref.load %arg13[%c8] : memref<13xf32, #tpu.memory_space<smem>>
    %c9 = arith.constant 9 : index
    %234 = memref.load %arg13[%c9] : memref<13xf32, #tpu.memory_space<smem>>
    %cst_49 = arith.constant dense<0.000000e+00> : vector<32x128xf32>
    %235 = tpu.matmul %222, %220, %cst_49 {dimension_numbers = #tpu.dot_dimension_numbers<[1], [0], [0], [1], [0, 0, 1, 1], [], []>} : vector<32x16xf32>, vector<16x128xf32>, vector<32x128xf32> -> vector<32x128xf32>
    %236 = vector.broadcast %225 : vector<32x1xf32> to vector<32x128xf32>
    %237 = arith.addf %235, %236 : vector<32x128xf32>
    %cst_50 = arith.constant 0.000000e+00 : f32
    %238 = vector.broadcast %cst_50 : f32 to vector<32x128xf32>
    %239 = arith.cmpf oge, %237, %238 : vector<32x128xf32>
    %240 = vector.broadcast %233 : f32 to vector<32x128xf32>
    %241 = arith.mulf %240, %237 : vector<32x128xf32>
    %242 = arith.select %239, %237, %241 : vector<32x128xi1>, vector<32x128xf32>
    %243 = vector.extract_strided_slice %228 {offsets = [0, 0], sizes = [32, 1], strides = [1, 1]} : vector<32x3xf32> to vector<32x1xf32>
    %244 = vector.broadcast %243 : vector<32x1xf32> to vector<32x128xf32>
    %245 = arith.mulf %244, %242 : vector<32x128xf32>
    %246 = vector.broadcast %226 : vector<32x1xf32> to vector<32x128xf32>
    %247 = arith.addf %245, %246 : vector<32x128xf32>
    %c126_i32_51 = arith.constant 126 : i32
    %248 = tpu.dynamic_rotate %242 by %c126_i32_51 dim 1 : vector<32x128xf32>, i32 -> vector<32x128xf32>
    %249 = vector.extract_strided_slice %228 {offsets = [0, 1], sizes = [32, 1], strides = [1, 1]} : vector<32x3xf32> to vector<32x1xf32>
    %250 = vector.broadcast %249 : vector<32x1xf32> to vector<32x128xf32>
    %251 = arith.mulf %250, %248 : vector<32x128xf32>
    %252 = arith.addf %247, %251 : vector<32x128xf32>
    %c124_i32_52 = arith.constant 124 : i32
    %253 = tpu.dynamic_rotate %242 by %c124_i32_52 dim 1 : vector<32x128xf32>, i32 -> vector<32x128xf32>
    %254 = vector.extract_strided_slice %228 {offsets = [0, 2], sizes = [32, 1], strides = [1, 1]} : vector<32x3xf32> to vector<32x1xf32>
    %255 = vector.broadcast %254 : vector<32x1xf32> to vector<32x128xf32>
    %256 = arith.mulf %255, %253 : vector<32x128xf32>
    %257 = arith.addf %252, %256 : vector<32x128xf32>
    %cst_53 = arith.constant 0.000000e+00 : f32
    %258 = vector.broadcast %cst_53 : f32 to vector<32x128xf32>
    %259 = arith.cmpf oge, %257, %258 : vector<32x128xf32>
    %260 = vector.broadcast %234 : f32 to vector<32x128xf32>
    %261 = arith.mulf %260, %257 : vector<32x128xf32>
    %262 = arith.select %259, %257, %261 : vector<32x128xi1>, vector<32x128xf32>
    %cst_54 = arith.constant dense<0.000000e+00> : vector<16x128xf32>
    %263 = tpu.matmul %230, %262, %cst_54 {dimension_numbers = #tpu.dot_dimension_numbers<[1], [0], [0], [1], [0, 0, 1, 1], [], []>} : vector<16x32xf32>, vector<32x128xf32>, vector<16x128xf32> -> vector<16x128xf32>
    %264 = vector.broadcast %232 : vector<16x1xf32> to vector<16x128xf32>
    %265 = arith.addf %263, %264 : vector<16x128xf32>
    %266 = arith.addf %220, %265 : vector<16x128xf32>
    %267 = vector.extract_strided_slice %32 {offsets = [5, 0, 0], sizes = [1, 32, 16], strides = [1, 1, 1]} : vector<6x32x16xf32> to vector<1x32x16xf32>
    %268 = vector.shape_cast %267 : vector<1x32x16xf32> to vector<32x16xf32>
    %269 = vector.extract_strided_slice %33 {offsets = [5, 0, 0], sizes = [1, 32, 2], strides = [1, 1, 1]} : vector<6x32x2xf32> to vector<1x32x2xf32>
    %270 = vector.shape_cast %269 : vector<1x32x2xf32> to vector<32x2xf32>
    %271 = vector.extract_strided_slice %270 {offsets = [0, 0], sizes = [32, 1], strides = [1, 1]} : vector<32x2xf32> to vector<32x1xf32>
    %272 = vector.extract_strided_slice %270 {offsets = [0, 1], sizes = [32, 1], strides = [1, 1]} : vector<32x2xf32> to vector<32x1xf32>
    %273 = vector.extract_strided_slice %34 {offsets = [5, 0, 0], sizes = [1, 32, 3], strides = [1, 1, 1]} : vector<6x32x3xf32> to vector<1x32x3xf32>
    %274 = vector.shape_cast %273 : vector<1x32x3xf32> to vector<32x3xf32>
    %275 = vector.extract_strided_slice %35 {offsets = [5, 0, 0], sizes = [1, 16, 32], strides = [1, 1, 1]} : vector<6x16x32xf32> to vector<1x16x32xf32>
    %276 = vector.shape_cast %275 : vector<1x16x32xf32> to vector<16x32xf32>
    %277 = vector.extract_strided_slice %36 {offsets = [5, 0, 0], sizes = [1, 16, 1], strides = [1, 1, 1]} : vector<6x16x1xf32> to vector<1x16x1xf32>
    %278 = vector.shape_cast %277 : vector<1x16x1xf32> to vector<16x1xf32>
    %c10 = arith.constant 10 : index
    %279 = memref.load %arg13[%c10] : memref<13xf32, #tpu.memory_space<smem>>
    %c11 = arith.constant 11 : index
    %280 = memref.load %arg13[%c11] : memref<13xf32, #tpu.memory_space<smem>>
    %cst_55 = arith.constant dense<0.000000e+00> : vector<32x128xf32>
    %281 = tpu.matmul %268, %266, %cst_55 {dimension_numbers = #tpu.dot_dimension_numbers<[1], [0], [0], [1], [0, 0, 1, 1], [], []>} : vector<32x16xf32>, vector<16x128xf32>, vector<32x128xf32> -> vector<32x128xf32>
    %282 = vector.broadcast %271 : vector<32x1xf32> to vector<32x128xf32>
    %283 = arith.addf %281, %282 : vector<32x128xf32>
    %cst_56 = arith.constant 0.000000e+00 : f32
    %284 = vector.broadcast %cst_56 : f32 to vector<32x128xf32>
    %285 = arith.cmpf oge, %283, %284 : vector<32x128xf32>
    %286 = vector.broadcast %279 : f32 to vector<32x128xf32>
    %287 = arith.mulf %286, %283 : vector<32x128xf32>
    %288 = arith.select %285, %283, %287 : vector<32x128xi1>, vector<32x128xf32>
    %289 = vector.extract_strided_slice %274 {offsets = [0, 0], sizes = [32, 1], strides = [1, 1]} : vector<32x3xf32> to vector<32x1xf32>
    %290 = vector.broadcast %289 : vector<32x1xf32> to vector<32x128xf32>
    %291 = arith.mulf %290, %288 : vector<32x128xf32>
    %292 = vector.broadcast %272 : vector<32x1xf32> to vector<32x128xf32>
    %293 = arith.addf %291, %292 : vector<32x128xf32>
    %c124_i32_57 = arith.constant 124 : i32
    %294 = tpu.dynamic_rotate %288 by %c124_i32_57 dim 1 : vector<32x128xf32>, i32 -> vector<32x128xf32>
    %295 = vector.extract_strided_slice %274 {offsets = [0, 1], sizes = [32, 1], strides = [1, 1]} : vector<32x3xf32> to vector<32x1xf32>
    %296 = vector.broadcast %295 : vector<32x1xf32> to vector<32x128xf32>
    %297 = arith.mulf %296, %294 : vector<32x128xf32>
    %298 = arith.addf %293, %297 : vector<32x128xf32>
    %c120_i32_58 = arith.constant 120 : i32
    %299 = tpu.dynamic_rotate %288 by %c120_i32_58 dim 1 : vector<32x128xf32>, i32 -> vector<32x128xf32>
    %300 = vector.extract_strided_slice %274 {offsets = [0, 2], sizes = [32, 1], strides = [1, 1]} : vector<32x3xf32> to vector<32x1xf32>
    %301 = vector.broadcast %300 : vector<32x1xf32> to vector<32x128xf32>
    %302 = arith.mulf %301, %299 : vector<32x128xf32>
    %303 = arith.addf %298, %302 : vector<32x128xf32>
    %cst_59 = arith.constant 0.000000e+00 : f32
    %304 = vector.broadcast %cst_59 : f32 to vector<32x128xf32>
    %305 = arith.cmpf oge, %303, %304 : vector<32x128xf32>
    %306 = vector.broadcast %280 : f32 to vector<32x128xf32>
    %307 = arith.mulf %306, %303 : vector<32x128xf32>
    %308 = arith.select %305, %303, %307 : vector<32x128xi1>, vector<32x128xf32>
    %cst_60 = arith.constant dense<0.000000e+00> : vector<16x128xf32>
    %309 = tpu.matmul %276, %308, %cst_60 {dimension_numbers = #tpu.dot_dimension_numbers<[1], [0], [0], [1], [0, 0, 1, 1], [], []>} : vector<16x32xf32>, vector<32x128xf32>, vector<16x128xf32> -> vector<16x128xf32>
    %310 = vector.broadcast %278 : vector<16x1xf32> to vector<16x128xf32>
    %311 = arith.addf %309, %310 : vector<16x128xf32>
    %312 = arith.addf %266, %311 : vector<16x128xf32>
    %c12 = arith.constant 12 : index
    %313 = memref.load %arg13[%c12] : memref<13xf32, #tpu.memory_space<smem>>
    %cst_61 = arith.constant 0.000000e+00 : f32
    %314 = vector.broadcast %cst_61 : f32 to vector<16x128xf32>
    %315 = arith.cmpf oge, %312, %314 : vector<16x128xf32>
    %316 = vector.broadcast %313 : f32 to vector<16x128xf32>
    %317 = arith.mulf %316, %312 : vector<16x128xf32>
    %318 = arith.select %315, %312, %317 : vector<16x128xi1>, vector<16x128xf32>
    %cst_62 = arith.constant dense<0.000000e+00> : vector<128xf32>
    %319 = vector.multi_reduction <add>, %318, %cst_62 [0] : vector<16x128xf32> to vector<128xf32>
    %320 = vector.shape_cast %319 : vector<128xf32> to vector<1x128xf32>
    %cst_63 = arith.constant 1.600000e+01 : f32
    %321 = vector.broadcast %cst_63 : f32 to vector<1x128xf32>
    %322 = arith.divf %320, %321 : vector<1x128xf32>
    %323 = vector.broadcast %322 : vector<1x128xf32> to vector<16x128xf32>
    %324 = arith.subf %318, %323 : vector<16x128xf32>
    %325 = arith.mulf %324, %324 : vector<16x128xf32>
    %cst_64 = arith.constant dense<0.000000e+00> : vector<128xf32>
    %326 = vector.multi_reduction <add>, %325, %cst_64 [0] : vector<16x128xf32> to vector<128xf32>
    %327 = vector.shape_cast %326 : vector<128xf32> to vector<1x128xf32>
    %cst_65 = arith.constant 1.600000e+01 : f32
    %328 = vector.broadcast %cst_65 : f32 to vector<1x128xf32>
    %329 = arith.divf %327, %328 : vector<1x128xf32>
    %330 = vector.broadcast %322 : vector<1x128xf32> to vector<16x128xf32>
    %331 = arith.subf %318, %330 : vector<16x128xf32>
    %cst_66 = arith.constant 9.99999993E-9 : f32
    %332 = vector.broadcast %cst_66 : f32 to vector<1x128xf32>
    %333 = arith.addf %329, %332 : vector<1x128xf32>
    %334 = math.rsqrt %333 : vector<1x128xf32>
    %335 = vector.broadcast %334 : vector<1x128xf32> to vector<16x128xf32>
    %336 = arith.mulf %331, %335 : vector<16x128xf32>
    %c0_67 = arith.constant 0 : index
    %c0_68 = arith.constant 0 : index
    %337 = vector.load %arg10[%c0_67, %c0_68] : memref<16x2xf32, #tpu.memory_space<vmem>>, vector<16x2xf32>
    %338 = vector.extract_strided_slice %337 {offsets = [0, 0], sizes = [16, 1], strides = [1, 1]} : vector<16x2xf32> to vector<16x1xf32>
    %339 = vector.broadcast %338 : vector<16x1xf32> to vector<16x128xf32>
    %340 = arith.mulf %336, %339 : vector<16x128xf32>
    %341 = vector.extract_strided_slice %337 {offsets = [0, 1], sizes = [16, 1], strides = [1, 1]} : vector<16x2xf32> to vector<16x1xf32>
    %342 = vector.broadcast %341 : vector<16x1xf32> to vector<16x128xf32>
    %343 = arith.addf %340, %342 : vector<16x128xf32>
    %c0_69 = arith.constant 0 : index
    %c0_70 = arith.constant 0 : index
    %344 = vector.load %arg11[%c0_69, %c0_70] : memref<1x16xf32, #tpu.memory_space<vmem>>, vector<1x16xf32>
    %cst_71 = arith.constant dense<0.000000e+00> : vector<1x128xf32>
    %345 = tpu.matmul %344, %343, %cst_71 {dimension_numbers = #tpu.dot_dimension_numbers<[1], [0], [0], [1], [0, 0, 1, 1], [], []>} : vector<1x16xf32>, vector<16x128xf32>, vector<1x128xf32> -> vector<1x128xf32>
    %c0_72 = arith.constant 0 : index
    %c0_73 = arith.constant 0 : index
    %346 = vector.load %arg12[%c0_72, %c0_73] : memref<1x1xf32, #tpu.memory_space<vmem>>, vector<1x1xf32>
    %347 = vector.broadcast %346 : vector<1x1xf32> to vector<1x128xf32>
    %348 = arith.addf %345, %347 : vector<1x128xf32>
    %c0_74 = arith.constant 0 : index
    %c0_75 = arith.constant 0 : index
    %c0_76 = arith.constant 0 : index
    %349 = vector.load %arg14[%c0_74, %c0_75, %c0_76] : memref<1x1x128xf32, #tpu.memory_space<vmem>>, vector<1x1x128xf32>
    %350 = vector.shape_cast %349 : vector<1x1x128xf32> to vector<1x128xf32>
    %351 = vector.shape_cast %348 : vector<1x128xf32> to vector<1x1x128xf32>
    tpu.vector_store %arg14[%c0_74, %c0_75, %c0_76], %351 {strides = array<i32>} : memref<1x1x128xf32, #tpu.memory_space<vmem>>, vector<1x1x128xf32>,
    return
  }
  func.func @transform_0(%arg0: i32) -> (i32, i32, i32) {
    %c0_i32 = arith.constant 0 : i32
    %c0_i32_0 = arith.constant 0 : i32
    %c0_i32_1 = arith.constant 0 : i32
    return %arg0, %c0_i32, %c0_i32_0 : i32, i32, i32
  }
  func.func @transform_1(%arg0: i32) -> (i32, i32) {
    %c0_i32 = arith.constant 0 : i32
    %c0_i32_0 = arith.constant 0 : i32
    %c0_i32_1 = arith.constant 0 : i32
    return %c0_i32, %c0_i32_0 : i32, i32
  }
  func.func @transform_2(%arg0: i32) -> (i32, i32) {
    %c0_i32 = arith.constant 0 : i32
    %c0_i32_0 = arith.constant 0 : i32
    %c0_i32_1 = arith.constant 0 : i32
    return %c0_i32, %c0_i32_0 : i32, i32
  }
  func.func @transform_3(%arg0: i32) -> (i32, i32) {
    %c0_i32 = arith.constant 0 : i32
    %c0_i32_0 = arith.constant 0 : i32
    %c0_i32_1 = arith.constant 0 : i32
    return %c0_i32, %c0_i32_0 : i32, i32
  }
  func.func @transform_4(%arg0: i32) -> (i32, i32, i32) {
    %c0_i32 = arith.constant 0 : i32
    %c0_i32_0 = arith.constant 0 : i32
    %c0_i32_1 = arith.constant 0 : i32
    %c0_i32_2 = arith.constant 0 : i32
    return %c0_i32, %c0_i32_0, %c0_i32_1 : i32, i32, i32
  }
  func.func @transform_5(%arg0: i32) -> (i32, i32, i32) {
    %c0_i32 = arith.constant 0 : i32
    %c0_i32_0 = arith.constant 0 : i32
    %c0_i32_1 = arith.constant 0 : i32
    %c0_i32_2 = arith.constant 0 : i32
    return %c0_i32, %c0_i32_0, %c0_i32_1 : i32, i32, i32
  }
  func.func @transform_6(%arg0: i32) -> (i32, i32, i32) {
    %c0_i32 = arith.constant 0 : i32
    %c0_i32_0 = arith.constant 0 : i32
    %c0_i32_1 = arith.constant 0 : i32
    %c0_i32_2 = arith.constant 0 : i32
    return %c0_i32, %c0_i32_0, %c0_i32_1 : i32, i32, i32
  }
  func.func @transform_7(%arg0: i32) -> (i32, i32, i32) {
    %c0_i32 = arith.constant 0 : i32
    %c0_i32_0 = arith.constant 0 : i32
    %c0_i32_1 = arith.constant 0 : i32
    %c0_i32_2 = arith.constant 0 : i32
    return %c0_i32, %c0_i32_0, %c0_i32_1 : i32, i32, i32
  }
  func.func @transform_8(%arg0: i32) -> (i32, i32, i32) {
    %c0_i32 = arith.constant 0 : i32
    %c0_i32_0 = arith.constant 0 : i32
    %c0_i32_1 = arith.constant 0 : i32
    %c0_i32_2 = arith.constant 0 : i32
    return %c0_i32, %c0_i32_0, %c0_i32_1 : i32, i32, i32
  }
  func.func @transform_9(%arg0: i32) -> (i32, i32) {
    %c0_i32 = arith.constant 0 : i32
    %c0_i32_0 = arith.constant 0 : i32
    %c0_i32_1 = arith.constant 0 : i32
    return %c0_i32, %c0_i32_0 : i32, i32
  }
  func.func @transform_10(%arg0: i32) -> (i32, i32) {
    %c0_i32 = arith.constant 0 : i32
    %c0_i32_0 = arith.constant 0 : i32
    %c0_i32_1 = arith.constant 0 : i32
    return %c0_i32, %c0_i32_0 : i32, i32
  }
  func.func @transform_11(%arg0: i32) -> (i32, i32) {
    %c0_i32 = arith.constant 0 : i32
    %c0_i32_0 = arith.constant 0 : i32
    %c0_i32_1 = arith.constant 0 : i32
    return %c0_i32, %c0_i32_0 : i32, i32
  }
  func.func @transform_12(%arg0: i32) -> i32 {
    %c0_i32 = arith.constant 0 : i32
    %c0_i32_0 = arith.constant 0 : i32
    return %c0_i32 : i32
  }
  func.func @transform_13(%arg0: i32) -> (i32, i32, i32) {
    %c0_i32 = arith.constant 0 : i32
    %c0_i32_0 = arith.constant 0 : i32
    %c0_i32_1 = arith.constant 0 : i32
    return %arg0, %c0_i32, %c0_i32_0 : i32, i32, i32
  }
}

</mosaic_0001>

<bundles_post_ra>
// kernel: tpu_custom_call.1
= control target key start
LH: loop header
LB: loop body
LE: loop exit
PB: predicated region body
PF: predicated region fallthrough
CT: control target
= control target key end

     0   :  { %s3417_s0 = inlined_call_operand.vmem [shape: f32[4,16,128], index: 0, kind: input, shape index: {}]   ;;  %s3418_s1 = inlined_call_operand.vmem [shape: f32[16,2], index: 1, kind: input, shape index: {}]   ;;  %s3419_s2 = inlined_call_operand.vmem [shape: f32[16,16], index: 2, kind: input, shape index: {}]   ;;  %s3420_s3 = inlined_call_operand.vmem [shape: f32[16,1], index: 3, kind: input, shape index: {}]   ;;  %s3421_s4 = inlined_call_operand.vmem [shape: f32[6,32,16], index: 4, kind: input, shape index: {}]   ;;  %s3422_s5 = inlined_call_operand.vmem [shape: f32[6,32,2], index: 5, kind: input, shape index: {}]   ;;  %s3423_s6 = inlined_call_operand.vmem [shape: f32[6,32,3], index: 6, kind: input, shape index: {}]   ;;  %s3424_s7 = inlined_call_operand.vmem [shape: f32[6,16,32], index: 7, kind: input, shape index: {}]   ;;  %s3425_s8 = inlined_call_operand.vmem [shape: f32[6,16,1], index: 8, kind: input, shape index: {}]   ;;  %s3426_s9 = inlined_call_operand.vmem [shape: f32[16,2], index: 9, kind: input, shape index: {}]   ;;  %s3427_s10 = inlined_call_operand.vmem [shape: f32[1,16], index: 10, kind: input, shape index: {}]   ;;  %s3428_s11 = inlined_call_operand.<no memory space> [shape: f32[1,1], index: 11, kind: input, shape index: {}]   ;;  %s3429_s12 = inlined_call_operand.vmem [shape: f32[13], index: 12, kind: input, shape index: {}]   ;;  %s3430_s13 = inlined_call_operand.hbm [shape: f32[4,1,128], index: 13, kind: output, shape index: {}]  }
   0x1   :  { %3437 = sst [smem:[#allocation9_spill]] %s3417_s0  ;;  %v18_v0 = vstv %s3428_s11 }
   0x2   :  { %3438 = sst [smem:[#allocation10_spill]] %s3418_s1  ;;  %19 = vst [vmem:[#allocation2] sm:$0x1] %v18_v0 }
   0x3   :  { %20 = vsyncpa [#allocation5], 0 }
   0x4   :  { %21 = vsyncpa [#allocation4], 0 }
   0x5   :  { %23 = vsyncpa [#allocation4 + $0x1], 0  ;;  %s2630_s27 = smov 0   ;;  %s2632_s28 = smov 0  }
   0x6   :  { %s2634_s29 = smov 0   ;;  %s2636_s30 = smov 0  }
   0x7 LB: > { %s2651_s11 = sadd.s32 4294967295, %s2546_s30   ;;  %s2266_s14 = sadd.s32 4294967294, %s2546_s30   ;;  %s2546_s30 = sphi %s2636_s30, %s3449_s30   ;;  %s2542_s29 = sphi %s2634_s29, %s3448_s29   ;;  %s2538_s28 = sphi %s2632_s28, %s3447_s28   ;;  %s2534_s27 = sphi %s2630_s27, %s3446_s27  }
   0x8   : > { %s2655_s15 = sadd.s32 1, %s2546_s30   ;;  %s314_s16 = sadd.s32 1, %s2542_s29 }
   0x9   : > { %s311_s17 = ssub.s32 %s2546_s30, %s2655_s15  ;;  %p324_p0 = scmp.ne.s32.totalorder %s2542_s29, %s2538_s28 }
   0xa   : > { %p312_p1 = scmp.eq.s32.totalorder %s311_s17, 0  ;;  %p325_p2 = scmp.eq.s32.totalorder %s2651_s11, 3 }
   0xb   : > { %p330_p3 = scmp.ne.s32.totalorder %s2538_s28, %s2534_s27  ;;  %p331_p4 = scmp.eq.s32.totalorder %s2266_s14, 3 }
   0xc   : > { %s2666_s18 = scalar_select %p312_p1, %s2542_s29, %s314_s16  }
   0xd   : > { %p2668_p5 = por %p325_p2, %p324_p0  ;;  %p2672_p6 = por %p331_p4, %p330_p3 }
   0xe   : > { %p2267_p7 = scmp.ge.s32.totalorder %s2546_s30, 1  ;;  %p338_p8 = scmp.lt.s32.totalorder %s2546_s30, 5 }
   0xf   : > { %p2342_p9 = scmp.eq.s32.totalorder %s2651_s11, 0  ;;  %s383_s23 = sshll.u32 %s3429_s12, 4  ;;  %s384_s23 = int_to_ptr.vmem [resolvable:$true] %s383_s23 }
  0x10   : > { %p339_p10 = pnand %p2267_p7, %p338_p8  ;;  %s2548_s24 = smov [#allocation3]  }
  0x12   : > { %p2334_p11 = pneg %p339_p10  ;;  %404 = sbr.rel (%p339_p10) target bundleno = 3118 (0xc2e), region = 72 }
  0x14   : > { %p2335_p12 = pnand %p2342_p9, %p2334_p11 }
  0x16   : > { %2337 = dma.vmem_to_smem (!%p2335_p12), %s384_s23, 16, %s2548_s24, [#allocation5]  }
  0x17   : > { %2525 = dma.done.wait (%p2342_p9), [#allocation5], 16  }
  0x18   : > { %2527 = vsyncadd (%p2342_p9), [#allocation5], 4294967280 }
  0x19   : > { %411 = sfence }
  0x1a   : > { %s3441_s1 = sld [smem:[#allocation10_spill]]  ;;  %v2549_v2 = vmov 1   ;;  %v2550_v3 = vmov 0   ;;  %p449_p13 = scmp.lt.s32.totalorder %s2651_s11, 3  ;;  %v591_v5 = vld [vmem:[%s3422_s5 + $0x18] sm:$0xff]  ;;  %v2700_v6 = vld [vmem:[%s3422_s5] sm:$0xff] }
  0x1b   : > { %2387 = vset.pattern.permute.xlu1 %v2549_v2  ;;  %2386 = vset.pattern.permute.xlu0 %v2550_v3  ;;  %s3442_s0 = sld [smem:[#allocation9_spill]]  ;;  %v2551_v7 = vmov 16.0   ;;  %v523_v43 = vld [vmem:[%s3420_s3 + $0x8] sm:$0xff]  ;;  %v522_v46 = vld [vmem:[%s3420_s3] sm:$0xff]  ;;  %vm534_vm4 = vcmask 130048   ;;  %v614_v58 = vld [vmem:[%s3423_s6 + $0x10] sm:$0xff] }
  0x1c   : > { %2388 = vset.pattern.permute.xlu2 %v2550_v3  ;;  %s450_s22 = scalar_select %p449_p13, %s2651_s11, 3  ;;  %2459 = vrcp.f32 %v2551_v7  ;;  %v589_v52 = vld [vmem:[%s3422_s5 + $0x8] sm:$0xff]  ;;  %v520_v57 = vld [vmem:[%s3419_s2] sm:$0xff]  ;;  %v590_v60 = vld [vmem:[%s3422_s5 + $0x10] sm:$0xff]  ;;  %vm867_vm13 = vcmask 261120  }
  0x1d   : > { %531 = vperm.xlu2 %2388, %v523_v43   ;;  %v521_v59 = vld [vmem:[%s3419_s2 + $0x8] sm:$0xff]  ;;  %v615_v61 = vld [vmem:[%s3423_s6 + $0x18] sm:$0xff]  ;;  %v2749_v63 = vld [vmem:[%s3423_s6] sm:$0xff]  ;;  %s660_s21 = sld [smem:[#allocation3]] }
  0x1e   : > { %s2327_s23 = sshll.u32 %s450_s22, 4  ;;  %v2741_v62 = vld [vmem:[%s3423_s6 + $0x8] sm:$0xff]  ;;  %s3431_s22 = smov 127  }
  0x1f   : > { %s2276_s26 = sld [smem:[#allocation3 + $0x1]] }
  0x20   : > { %v497_v1 = vld [vmem:[%s3441_s1 + $0x8] sm:$0xff]  ;;  %v496_v4 = vld [vmem:[%s3441_s1] sm:$0xff]  ;;  %s2284_s25 = sld [smem:[#allocation3 + $0x3]] }
  0x21   : > { %515 = vperm.xlu1 %2387, %v497_v1   ;;  %505 = vperm.xlu0 %2386, %v497_v1   ;;  %s453_s16 = scalar_lea.vmem %s3442_s0, %s2327_s23  ;;  %s2554_s23 = smov 126  }
  0x22   : > { %v454_v8 = vld [vmem:[%s453_s16] sm:$0xff]  ;;  %v455_v9 = vld [vmem:[%s453_s16 + $0x8] sm:$0xff]  ;;  %v2460_v12 = vpop.eup %2459  ;;  %s3435_s16 = smov 124   ;;  %s2292_s14 = sld [smem:[#allocation3 + $0x5]] }
  0x23   : > { %v456_v10 = vadd.f32 %v455_v9, %v454_v8  ;;  %v464_v14 = vmul.f32 16.0, %v2460_v12  ;;  %vm468_vm0 = vweird.f32 %v2460_v12  ;;  %s2308_s17 = sld [smem:[#allocation3 + $0x9]] }
  0x24   : > { %s2323_s24 = sld [smem:[#allocation3 + $0xc]] }
  0x25   : > { %v457_v11 = vrot.slane %v456_v10, 4  ;;  %v465_v16 = vsub.f32 1.0, %v464_v14  ;;  %526 = vperm.xlu2 %2388, %v522_v46  }
  0x27   : > { %v458_v13 = vadd.f32 %v457_v11, %v456_v10  ;;  %v466_v18 = vmul.f32 %v2460_v12, %v465_v16  ;;  %v566_v10 = vld [vmem:[%s3421_s4 + $0x10] sm:$0xff]  ;;  %v567_v11 = vld [vmem:[%s3421_s4 + $0x18] sm:$0xff]  ;;  %v727_v16 = vstv %s660_s21  ;;  %s3443_s21 = smov 127  }
  0x29   : > { %511 = vperm.xlu1 %2387, %v496_v4   ;;  %500 = vperm.xlu0 %2386, %v496_v4   ;;  %v459_v15 = vrot.slane %v458_v13, 2  ;;  %v467_v20 = vadd.f32 %v2460_v12, %v466_v18 }
  0x2b   : > { %v460_v17 = vadd.f32 %v459_v15, %v458_v13  ;;  %v2707_v22 = vsel %vm468_vm0, %v2460_v12, %v467_v20  ;;  %v2552_v12 = vmov 2  }
  0x2d   : > { %v461_v19 = vrot.slane %v460_v17, 1  ;;  %669 = vperm.xlu2 %2388, %v589_v52  }
  0x2f   : > { %v462_v21 = vadd.f32 %v461_v19, %v460_v17 }
  0x31   : > { %679 = vperm.xlu0 %2386, %v591_v5   ;;  %2389 = vset.pattern.permute.xlu1 %v2550_v3  ;;  %v470_v23 = vmul.f32 %v2707_v22, %v462_v21 }
  0x32   : > { %674 = vperm.xlu1 %2389, %v590_v60  }
  0x33   : > { %v471_v24 = vsub.f32 %v454_v8, %v470_v23  ;;  %v472_v25 = vsub.f32 %v455_v9, %v470_v23  ;;  %v564_v9 = vld [vmem:[%s3421_s4] sm:$0xff] }
  0x35   : > { %v473_v26 = vmul.f32 %v471_v24, %v471_v24  ;;  %v474_v27 = vmul.f32 %v472_v25, %v472_v25  ;;  %748 = vperm.xlu2 %2388, %v614_v58  }
  0x37   : > { %v475_v28 = vadd.f32 %v474_v27, %v473_v26 }
  0x39   : > { %664 = vperm.xlu0 %2386, %v2700_v6   ;;  %v476_v29 = vrot.slane %v475_v28, 4 }
  0x3a   : > { %753 = vperm.xlu1 %2389, %v615_v61  }
  0x3b   : > { %v477_v30 = vadd.f32 %v476_v29, %v475_v28 }
  0x3d   : > { %v478_v31 = vrot.slane %v477_v30, 2  ;;  %2391 = vset.pattern.permute.xlu2 %v2549_v2 }
  0x3e   : > { %801 = vperm.xlu2 %2391, %v615_v61  }
  0x3f   : > { %v479_v32 = vadd.f32 %v478_v31, %v477_v30 }
  0x41   : > { %2390 = vset.pattern.permute.xlu0 %v2549_v2  ;;  %v480_v33 = vrot.slane %v479_v32, 1 }
  0x42   : > { %773 = vperm.xlu0 %2390, %v591_v5   ;;  %743 = vperm.xlu1 %2389, %v2741_v62  }
  0x43   : > { %v481_v34 = vadd.f32 %v480_v33, %v479_v32 }
  0x45   : > { %v482_v35 = vmul.f32 %v481_v34, %v2707_v22 }
  0x46   : > { %769 = vperm.xlu2 %2391, %v590_v60  }
  0x47   : > { %v483_v36 = vadd.f32 1e-08, %v482_v35 }
  0x49   : > { %2461 = vrsqrt.f32 %v483_v36  ;;  %vm490_vm1 = vweird.f32 %v483_v36 }
  0x4a   : > { %2392 = vset.pattern.permute.xlu1 %v2549_v2  ;;  %2393 = vset.pattern.permute.xlu0 %v2552_v12 }
  0x4b   : > { %797 = vperm.xlu1 %2392, %v614_v58   ;;  %833 = vperm.xlu0 %2393, %v615_v61  }
  0x4e   : > { %765 = vperm.xlu2 %2391, %v589_v52  }
  0x4f   : > { %v2462_v37 = vpop.eup %2461 }
  0x50   : > { %v485_v38 = vmul.f32 %v2462_v37, %v483_v36  ;;  %vm491_vm2 = vweird.f32 %v2462_v37 }
  0x51   : > { %vm492_vm3 = vmor %vm490_vm1, %vm491_vm2 }
  0x52   : > { %v486_v39 = vmul.f32 %v2462_v37, %v485_v38 }
  0x53   : > { %2394 = vset.pattern.permute.xlu1 %v2550_v3 }
  0x54   : > { %v487_v40 = vmul.f32 0.5, %v486_v39  ;;  %738 = vperm.xlu1 %2394, %v2749_v63  }
  0x56   : > { %v488_v41 = vsub.f32 1.5, %v487_v40  ;;  %793 = vperm.xlu2 %2391, %v2741_v62  }
  0x58   : > { %v489_v42 = vmul.f32 %v2462_v37, %v488_v41 }
  0x5a   : > { %v493_v44 = vsel %vm492_vm3, %v2462_v37, %v489_v42 }
  0x5b   : > { %v495_v45 = vmul.f32 %v493_v44, %v472_v25  ;;  %v494_v51 = vmul.f32 %v493_v44, %v471_v24 }
  0x5c   : > { %2395 = vset.pattern.permute.xlu1 %v2552_v12 }
  0x5d   : > { %829 = vperm.xlu1 %2395, %v614_v58  }
  0x5e   : > { %761 = vperm.xlu2 %2391, %v2700_v6   ;;  %v565_v6 = vld [vmem:[%s3421_s4 + $0x8] sm:$0xff] }
  0x65   : > { %2396 = vset.pattern.permute.xlu1 %v2549_v2 }
  0x66   : > { %2397 = vset.pattern.permute.xlu2 %v2552_v12  ;;  %789 = vperm.xlu1 %2396, %v2749_v63  }
  0x6e   : > { %2399 = vset.pattern.permute.xlu1 %v2550_v3 }
  0x77   : > { %v532_v0 = vpop.permute.xlu2 %531 }
  0x7f   : > { %v527_v7 = vpop.permute.xlu2 %526 }
  0x87   : > { %v670_v20 = vpop.permute.xlu2 %669 }
  0x8f   : > { %v749_v35 = vpop.permute.xlu2 %748 }
  0x93   : > { %v516_v47 = vpop.permute.xlu1 %515  ;;  %v506_v48 = vpop.permute.xlu0 %505 }
  0x94   : > { %v509_v49 = vmul.f32 %v506_v48, %v495_v45 }
  0x96   : > { %v519_v50 = vadd.f32 %v516_v47, %v509_v49 }
  0x98   : > { %555 = vmatpush.msra.mxu0 %v519_v50  ;;  %v802_v37 = vpop.permute.xlu2 %801  ;;  %v648_v50 = vld [vmem:[%s3425_s8] sm:$0xff] }
  0x9b   : > { %v501_v53 = vpop.permute.xlu0 %500  ;;  %v512_v55 = vpop.permute.xlu1 %511 }
  0x9c   : > { %v508_v54 = vmul.f32 %v501_v53, %v494_v51 }
  0x9e   : > { %v518_v56 = vadd.f32 %v512_v55, %v508_v54  ;;  %v2808_v55 = vld [vmem:[%s3422_s5 + $0x30] sm:$0xff] }
  0xa0   : > { %556 = vmatpush.msra.mxu0 %v518_v56  ;;  %v770_v39 = vpop.permute.xlu2 %769  ;;  %v649_v56 = vld [vmem:[%s3425_s8 + $0x8] sm:$0xff] }
  0xa1   : > { %2274 = vmatmul.msk.f32.vlgmr.msra.gmra.mxu0 %vm534_vm4, %v520_v57 }
  0xa3   : > { %v680_v13 = vpop.permute.xlu0 %679 }
  0xa4   : > { %v675_v26 = vpop.permute.xlu1 %674 }
  0xa8   : > { %v766_v41 = vpop.permute.xlu2 %765 }
  0xa9   : > { %2275 = vmatmul.msk.f32.gmra.mxu0 %vm534_vm4, %v521_v59 }
  0xab   : > { %v665_v14 = vpop.permute.xlu0 %664 }
  0xac   : > { %v754_v36 = vpop.permute.xlu1 %753 }
  0xb0   : > { %v794_v44 = vpop.permute.xlu2 %793 }
  0xb4   : > { %v744_v38 = vpop.permute.xlu1 %743  ;;  %v774_v43 = vpop.permute.xlu0 %773 }
  0xb8   : > { %v762_v47 = vpop.permute.xlu2 %761 }
  0xbd   : > { %v798_v40 = vpop.permute.xlu1 %797  ;;  %v834_v46 = vpop.permute.xlu0 %833 }
  0xc6   : > { %v739_v42 = vpop.permute.xlu1 %738 }
  0xcf   : > { %v830_v45 = vpop.permute.xlu1 %829 }
  0xd8   : > { %v790_v48 = vpop.permute.xlu1 %789 }
 0x11e   : > { %v558_v1 = vpop.f32.mrf.mxu0 }
 0x11f   : > { %v2756_v8 = vadd.f32 %v558_v1, %v527_v7  ;;  %v619_v7 = vld [vmem:[%s3423_s6 + $0x38] sm:$0xff] }
 0x126   : > { %v561_v4 = vpop.f32.mrf.mxu0 }
 0x127   : > { %v2754_v5 = vadd.f32 %v561_v4, %v532_v0 }
 0x129   : > { %708 = vmatpush.msra.mxu1 %v2754_v5 }
 0x12b   : > { %709 = vmatpush.msra.mxu1 %v2756_v8 }
 0x12c   : > { %2277 = vmatmul.msk.f32.vlgmr.msra.gmra.mxu1 %vm534_vm4, %v564_v9  ;;  %v2820_v9 = vld [vmem:[%s3422_s5 + $0x20] sm:$0xff] }
 0x134   : > { %2278 = vmatmul.msk.f32.gmra.mxu1 %vm534_vm4, %v565_v6 }
 0x13c   : > { %2279 = vmatmul.msk.f32.gmra.mxu1 %vm534_vm4, %v566_v10 }
 0x144   : > { %2280 = vmatmul.msk.f32.gmra.mxu1 %vm534_vm4, %v567_v11 }
 0x1a9   : > { %v711_v15 = vpop.f32.mrf.mxu1 }
 0x1aa   : > { %v712_v17 = vadd.f32 %v711_v15, %v665_v14  ;;  %v848_v15 = vstv %s2276_s26  ;;  %s3444_s26 = smov 124  }
 0x1ac   : > { %vm723_vm5 = vcmp.ge.f32.partialorder %v712_v17, 0.0  ;;  %v728_v18 = vmul.f32 %v727_v16, %v712_v17 }
 0x1ae   : > { %v2782_v19 = vsel %vm723_vm5, %v712_v17, %v728_v18 }
 0x1af   : > { %780 = vrot.lane.b32.xlu0 %v2782_v19, %s3431_s22  ;;  %v756_v6 = vmul.f32 %v739_v42, %v2782_v19  ;;  %v595_v42 = vld [vmem:[%s3422_s5 + $0x38] sm:$0xff] }
 0x1b1   : > { %v714_v21 = vpop.f32.mrf.mxu1 }
 0x1b2   : > { %v715_v23 = vadd.f32 %v714_v21, %v670_v20  ;;  %v776_v21 = vadd.f32 %v762_v47, %v756_v6 }
 0x1b4   : > { %v729_v24 = vmul.f32 %v727_v16, %v715_v23  ;;  %vm724_vm6 = vcmp.ge.f32.partialorder %v715_v23, 0.0 }
 0x1b6   : > { %v2786_v25 = vsel %vm724_vm6, %v715_v23, %v729_v24 }
 0x1b7   : > { %814 = vrot.lane.b32.xlu2 %v2786_v25, %s2554_s23  ;;  %782 = vrot.lane.b32.xlu1 %v2786_v25, %s3431_s22 }
 0x1b9   : > { %v717_v27 = vpop.f32.mrf.mxu1 }
 0x1ba   : > { %v718_v28 = vadd.f32 %v717_v27, %v675_v26 }
 0x1bc   : > { %v730_v29 = vmul.f32 %v727_v16, %v718_v28  ;;  %vm725_vm7 = vcmp.ge.f32.partialorder %v718_v28, 0.0 }
 0x1be   : > { %v734_v30 = vsel %vm725_vm7, %v718_v28, %v730_v29 }
 0x1bf   : > { %784 = vrot.lane.b32.xlu0 %v734_v30, %s3431_s22  ;;  %v758_v54 = vmul.f32 %v749_v35, %v734_v30 }
 0x1c1   : > { %v720_v31 = vpop.f32.mrf.mxu1  ;;  %v778_v60 = vadd.f32 %v770_v39, %v758_v54  ;;  %v636_v39 = vld [vmem:[%s3424_s7] sm:$0xff] }
 0x1c2   : > { %v721_v32 = vadd.f32 %v720_v31, %v680_v13  ;;  %v757_v13 = vmul.f32 %v744_v38, %v2786_v25  ;;  %v568_v54 = vld [vmem:[%s3421_s4 + $0x20] sm:$0xff] }
 0x1c4   : > { %v731_v33 = vmul.f32 %v727_v16, %v721_v32  ;;  %vm726_vm8 = vcmp.ge.f32.partialorder %v721_v32, 0.0  ;;  %v777_v26 = vadd.f32 %v766_v41, %v757_v13  ;;  %v637_v41 = vld [vmem:[%s3424_s7 + $0x8] sm:$0xff] }
 0x1c6   : > { %v735_v34 = vsel %vm726_vm8, %v721_v32, %v731_v33  ;;  %v2828_v32 = vld [vmem:[%s3423_s6 + $0x28] sm:$0xff] }
 0x1c7   : > { %818 = vrot.lane.b32.xlu2 %v735_v34, %s2554_s23  ;;  %786 = vrot.lane.b32.xlu1 %v735_v34, %s3431_s22  ;;  %v759_v57 = vmul.f32 %v754_v36, %v735_v34  ;;  %s2283_s22 = sld [smem:[#allocation3 + $0x2]] }
 0x1c8   : > { %816 = vrot.lane.b32.xlu0 %v734_v30, %s2554_s23 }
 0x1cf   : > { %812 = vrot.lane.b32.xlu1 %v2782_v19, %s2554_s23  ;;  %821 = vperm.xlu2 %2397, %v2749_v63  }
 0x1d0   : > { %825 = vperm.xlu0 %2393, %v2741_v62   ;;  %v779_v62 = vadd.f32 %v774_v43, %v759_v57  ;;  %v593_v43 = vld [vmem:[%s3422_s5 + $0x28] sm:$0xff] }
 0x1d7   : > { %2400 = vset.pattern.permute.xlu2 %v2550_v3  ;;  %859 = vperm.xlu1 %2399, %v648_v50  }
 0x1d8   : > { %2398 = vset.pattern.permute.xlu0 %v2550_v3  ;;  %918 = vperm.xlu2 %2400, %v595_v42  }
 0x1d9   : > { %864 = vperm.xlu0 %2398, %v649_v56  }
 0x1df   : > { %913 = vperm.xlu1 %2399, %v2808_v55  }
 0x1e0   : > { %908 = vperm.xlu2 %2400, %v593_v43  }
 0x1e1   : > { %903 = vperm.xlu0 %2398, %v2820_v9  }
 0x1e7   : > { %992 = vperm.xlu1 %2399, %v619_v7  }
 0x1e9   : > { %2401 = vset.pattern.permute.xlu0 %v2549_v2 }
 0x1ea   : > { %1012 = vperm.xlu0 %2401, %v595_v42  }
 0x1ef   : > { %982 = vperm.xlu1 %2399, %v2828_v32  }
 0x1f2   : > { %2404 = vset.pattern.permute.xlu0 %v2552_v12 }
 0x1f3   : > { %1072 = vperm.xlu0 %2404, %v619_v7  }
 0x1f7   : > { %2403 = vset.pattern.permute.xlu1 %v2549_v2 }
 0x211   : > { %v815_v51 = vpop.permute.xlu2 %814 }
 0x221   : > { %v781_v49 = vpop.permute.xlu0 %780  ;;  %v819_v58 = vpop.permute.xlu2 %818 }
 0x222   : > { %v839_v10 = vmul.f32 %v834_v46, %v819_v58  ;;  %v804_v16 = vmul.f32 %v790_v48, %v781_v49  ;;  %v2856_v46 = vld [vmem:[%s3423_s6 + $0x20] sm:$0xff] }
 0x224   : > { %v808_v19 = vadd.f32 %v804_v16, %v776_v21 }
 0x229   : > { %v783_v52 = vpop.permute.xlu1 %782  ;;  %v822_v20 = vpop.permute.xlu2 %821 }
 0x22a   : > { %v805_v18 = vmul.f32 %v794_v44, %v783_v52  ;;  %v618_v44 = vld [vmem:[%s3423_s6 + $0x30] sm:$0xff] }
 0x22b   : > { %1036 = vperm.xlu1 %2403, %v618_v44   ;;  %987 = vperm.xlu2 %2400, %v618_v44  }
 0x22c   : > { %v809_v30 = vadd.f32 %v805_v18, %v777_v26 }
 0x231   : > { %v785_v53 = vpop.permute.xlu0 %784 }
 0x232   : > { %v806_v59 = vmul.f32 %v798_v40, %v785_v53  ;;  %v919_v56 = vpop.permute.xlu2 %918 }
 0x233   : > { %2405 = vset.pattern.permute.xlu1 %v2550_v3  ;;  %2402 = vset.pattern.permute.xlu2 %v2549_v2 }
 0x234   : > { %v810_v1 = vadd.f32 %v806_v59, %v778_v60  ;;  %1040 = vperm.xlu2 %2402, %v619_v7   ;;  %977 = vperm.xlu1 %2405, %v2856_v46   ;;  %v966_v59 = vstv %s2283_s22  ;;  %s2291_s22 = sld [smem:[#allocation3 + $0x4]] }
 0x239   : > { %v787_v61 = vpop.permute.xlu1 %786 }
 0x23a   : > { %v807_v63 = vmul.f32 %v802_v37, %v787_v61  ;;  %v817_v0 = vpop.permute.xlu0 %816 }
 0x23b   : > { %v838_v4 = vmul.f32 %v830_v45, %v817_v0 }
 0x23c   : > { %v811_v11 = vadd.f32 %v807_v63, %v779_v62  ;;  %1008 = vperm.xlu2 %2402, %v2808_v55   ;;  %2406 = vset.pattern.permute.xlu1 %v2552_v12  ;;  %v571_v55 = vld [vmem:[%s3421_s4 + $0x38] sm:$0xff]  ;;  %v909_v63 = vpop.permute.xlu2 %908 }
 0x23d   : > { %v842_v14 = vadd.f32 %v838_v4, %v810_v1  ;;  %1068 = vperm.xlu1 %2406, %v618_v44  }
 0x23e   : > { %v843_v17 = vadd.f32 %v839_v10, %v811_v11 }
 0x23f   : > { %v851_v24 = vmul.f32 %v848_v15, %v842_v14  ;;  %vm846_vm10 = vcmp.ge.f32.partialorder %v842_v14, 0.0 }
 0x240   : > { %vm847_vm9 = vcmp.ge.f32.partialorder %v843_v17, 0.0  ;;  %v852_v23 = vmul.f32 %v848_v15, %v843_v17 }
 0x241   : > { %v813_v27 = vpop.permute.xlu1 %812  ;;  %v855_v34 = vsel %vm846_vm10, %v842_v14, %v851_v24 }
 0x242   : > { %v836_v28 = vmul.f32 %v822_v20, %v813_v27  ;;  %v826_v29 = vpop.permute.xlu0 %825  ;;  %v856_v25 = vsel %vm847_vm9, %v843_v17, %v852_v23 }
 0x243   : > { %v837_v31 = vmul.f32 %v826_v29, %v815_v51  ;;  %886 = vmatpush.msra.mxu2 %v856_v25 }
 0x244   : > { %v840_v33 = vadd.f32 %v836_v28, %v808_v19  ;;  %1004 = vperm.xlu2 %2402, %v593_v43  }
 0x245   : > { %v841_v35 = vadd.f32 %v837_v31, %v809_v30  ;;  %887 = vmatpush.msra.mxu2 %v855_v34  ;;  %2407 = vset.pattern.permute.xlu1 %v2549_v2  ;;  %v650_v31 = vld [vmem:[%s3425_s8 + $0x10] sm:$0xff] }
 0x246   : > { %v849_v37 = vmul.f32 %v848_v15, %v840_v33  ;;  %vm844_vm12 = vcmp.ge.f32.partialorder %v840_v33, 0.0  ;;  %1028 = vperm.xlu1 %2407, %v2856_v46  }
 0x247   : > { %vm845_vm11 = vcmp.ge.f32.partialorder %v841_v35, 0.0  ;;  %v850_v36 = vmul.f32 %v848_v15, %v841_v35 }
 0x248   : > { %v853_v40 = vsel %vm844_vm12, %v840_v33, %v849_v37 }
 0x249   : > { %v854_v38 = vsel %vm845_vm11, %v841_v35, %v850_v36  ;;  %v860_v47 = vpop.permute.xlu1 %859  ;;  %v2917_v35 = vld [vmem:[%s3422_s5 + $0x50] sm:$0xff] }
 0x24a   : > { %888 = vmatpush.msra.mxu2 %v854_v38 }
 0x24b   : > { %v865_v48 = vpop.permute.xlu0 %864 }
 0x24c   : > { %889 = vmatpush.msra.mxu2 %v853_v40  ;;  %1032 = vperm.xlu2 %2402, %v2828_v32   ;;  %v651_v40 = vld [vmem:[%s3425_s8 + $0x18] sm:$0xff] }
 0x24d   : > { %2281 = vmatmul.msk.f32.vlgmr.msra.gmra.mxu2 %vm867_vm13, %v636_v39 }
 0x24e   : > { %2410 = vset.pattern.permute.xlu1 %v2550_v3 }
 0x253   : > { %v904_v57 = vpop.permute.xlu0 %903 }
 0x254   : > { %1000 = vperm.xlu2 %2402, %v2820_v9   ;;  %v914_v9 = vpop.permute.xlu1 %913 }
 0x255   : > { %2282 = vmatmul.msk.f32.gmra.mxu2 %vm867_vm13, %v637_v41  ;;  %v2926_v41 = vld [vmem:[%s3423_s6 + $0x58] sm:$0xff] }
 0x25c   : > { %2408 = vset.pattern.permute.xlu2 %v2552_v12  ;;  %v993_v20 = vpop.permute.xlu1 %992  ;;  %v1013_v28 = vpop.permute.xlu0 %1012 }
 0x264   : > { %v983_v23 = vpop.permute.xlu1 %982 }
 0x265   : > { %v1073_v30 = vpop.permute.xlu0 %1072 }
 0x285   : > { %v988_v18 = vpop.permute.xlu2 %987 }
 0x28e   : > { %v1041_v21 = vpop.permute.xlu2 %1040 }
 0x296   : > { %v1009_v24 = vpop.permute.xlu2 %1008 }
 0x29d   : > { %v1037_v26 = vpop.permute.xlu1 %1036 }
 0x29e   : > { %v1005_v27 = vpop.permute.xlu2 %1004 }
 0x2a6   : > { %v978_v19 = vpop.permute.xlu1 %977  ;;  %v1033_v29 = vpop.permute.xlu2 %1032 }
 0x2af   : > { %v1069_v25 = vpop.permute.xlu1 %1068 }
 0x2b8   : > { %v1029_v33 = vpop.permute.xlu1 %1028 }
 0x2d0   : > { %v891_v45 = vpop.f32.mrf.mxu2 }
 0x2d1   : > { %v892_v50 = vadd.f32 %v891_v45, %v860_v47 }
 0x2d3   : > { %v2866_v53 = vadd.f32 %v892_v50, %v2756_v8  ;;  %v570_v8 = vld [vmem:[%s3421_s4 + $0x30] sm:$0xff] }
 0x2d8   : > { %v894_v49 = vpop.f32.mrf.mxu2 }
 0x2d9   : > { %v895_v51 = vadd.f32 %v894_v49, %v865_v48 }
 0x2db   : > { %v2862_v52 = vadd.f32 %v895_v51, %v2754_v5  ;;  %v569_v5 = vld [vmem:[%s3421_s4 + $0x28] sm:$0xff] }
 0x2dd   : > { %947 = vmatpush.msra.mxu3 %v2862_v52 }
 0x2df   : > { %948 = vmatpush.msra.mxu3 %v2866_v53 }
 0x2e0   : > { %2285 = vmatmul.msk.f32.vlgmr.msra.gmra.mxu3 %vm534_vm4, %v568_v54  ;;  %v2932_v54 = vld [vmem:[%s3422_s5 + $0x40] sm:$0xff] }
 0x2e8   : > { %2286 = vmatmul.msk.f32.gmra.mxu3 %vm534_vm4, %v569_v5  ;;  %v2937_v5 = vld [vmem:[%s3423_s6 + $0x48] sm:$0xff] }
 0x2f0   : > { %2287 = vmatmul.msk.f32.gmra.mxu3 %vm534_vm4, %v570_v8 }
 0x2f8   : > { %2288 = vmatmul.msk.f32.gmra.mxu3 %vm534_vm4, %v571_v55 }
 0x363   : > { %v950_v58 = vpop.f32.mrf.mxu3 }
 0x364   : > { %v951_v60 = vadd.f32 %v950_v58, %v904_v57 }
 0x366   : > { %vm962_vm14 = vcmp.ge.f32.partialorder %v951_v60, 0.0  ;;  %v967_v61 = vmul.f32 %v966_v59, %v951_v60 }
 0x368   : > { %v2891_v62 = vsel %vm962_vm14, %v951_v60, %v967_v61 }
 0x369   : > { %1019 = vrot.lane.b32.xlu0 %v2891_v62, %s2554_s23  ;;  %v995_v8 = vmul.f32 %v978_v19, %v2891_v62  ;;  %v599_v19 = vld [vmem:[%s3422_s5 + $0x58] sm:$0xff] }
 0x36b   : > { %v953_v0 = vpop.f32.mrf.mxu3 }
 0x36c   : > { %v954_v1 = vadd.f32 %v953_v0, %v909_v63 }
 0x36e   : > { %v968_v4 = vmul.f32 %v966_v59, %v954_v1  ;;  %vm963_vm15 = vcmp.ge.f32.partialorder %v954_v1, 0.0 }
 0x370   : > { %v2895_v7 = vsel %vm963_vm15, %v954_v1, %v968_v4 }
 0x371   : > { %1053 = vrot.lane.b32.xlu2 %v2895_v7, %s3435_s16  ;;  %1021 = vrot.lane.b32.xlu1 %v2895_v7, %s2554_s23  ;;  %v996_v57 = vmul.f32 %v983_v23, %v2895_v7 }
 0x373   : > { %v956_v6 = vpop.f32.mrf.mxu3 }
 0x374   : > { %v957_v10 = vadd.f32 %v956_v6, %v914_v9  ;;  %v1016_v6 = vadd.f32 %v1005_v27, %v996_v57  ;;  %v639_v27 = vld [vmem:[%s3424_s7 + $0x18] sm:$0xff] }
 0x376   : > { %v969_v11 = vmul.f32 %v966_v59, %v957_v10  ;;  %vm964_vm0 = vcmp.ge.f32.partialorder %v957_v10, 0.0 }
 0x378   : > { %v973_v13 = vsel %vm964_vm0, %v957_v10, %v969_v11 }
 0x379   : > { %1023 = vrot.lane.b32.xlu0 %v973_v13, %s2554_s23  ;;  %v997_v39 = vmul.f32 %v988_v18, %v973_v13 }
 0x37b   : > { %v959_v14 = vpop.f32.mrf.mxu3  ;;  %v1017_v45 = vadd.f32 %v1009_v24, %v997_v39  ;;  %v638_v24 = vld [vmem:[%s3424_s7 + $0x10] sm:$0xff]  ;;  %v572_v39 = vld [vmem:[%s3421_s4 + $0x40] sm:$0xff] }
 0x37c   : > { %v960_v15 = vadd.f32 %v959_v14, %v919_v56 }
 0x37e   : > { %v970_v16 = vmul.f32 %v966_v59, %v960_v15  ;;  %vm965_vm1 = vcmp.ge.f32.partialorder %v960_v15, 0.0  ;;  %v1087_v59 = vstv %s2284_s25  ;;  %s3433_s25 = smov 120  }
 0x380   : > { %v974_v17 = vsel %vm965_vm1, %v960_v15, %v970_v16 }
 0x381   : > { %1057 = vrot.lane.b32.xlu2 %v974_v17, %s3435_s16  ;;  %1025 = vrot.lane.b32.xlu1 %v974_v17, %s2554_s23  ;;  %v998_v42 = vmul.f32 %v993_v20, %v974_v17 }
 0x382   : > { %1055 = vrot.lane.b32.xlu0 %v973_v13, %s3435_s16 }
 0x383   : > { %v1018_v47 = vadd.f32 %v1013_v28, %v998_v42  ;;  %v597_v28 = vld [vmem:[%s3422_s5 + $0x48] sm:$0xff] }
 0x389   : > { %1051 = vrot.lane.b32.xlu1 %v2891_v62, %s3435_s16  ;;  %1060 = vperm.xlu2 %2408, %v2856_v46  }
 0x38a   : > { %1064 = vperm.xlu0 %2404, %v2828_v32   ;;  %v1001_v32 = vpop.permute.xlu2 %1000 }
 0x38b   : > { %v1015_v1 = vadd.f32 %v1001_v32, %v995_v8 }
 0x391   : > { %2411 = vset.pattern.permute.xlu2 %v2550_v3  ;;  %1098 = vperm.xlu1 %2410, %v650_v31  }
 0x392   : > { %2409 = vset.pattern.permute.xlu0 %v2550_v3  ;;  %1156 = vperm.xlu2 %2411, %v599_v19  }
 0x393   : > { %1103 = vperm.xlu0 %2409, %v651_v40  }
 0x399   : > { %1151 = vperm.xlu1 %2410, %v2917_v35  }
 0x39a   : > { %1146 = vperm.xlu2 %2411, %v597_v28  }
 0x39b   : > { %1141 = vperm.xlu0 %2409, %v2932_v54  }
 0x3a1   : > { %1230 = vperm.xlu1 %2410, %v2926_v41  }
 0x3a3   : > { %2412 = vset.pattern.permute.xlu0 %v2549_v2 }
 0x3a4   : > { %1250 = vperm.xlu0 %2412, %v599_v19  }
 0x3a9   : > { %1220 = vperm.xlu1 %2410, %v2937_v5  }
 0x3ac   : > { %2415 = vset.pattern.permute.xlu0 %v2552_v12 }
 0x3ad   : > { %1310 = vperm.xlu0 %2415, %v2926_v41  }
 0x3b1   : > { %2414 = vset.pattern.permute.xlu1 %v2549_v2 }
 0x3cb   : > { %v1054_v36 = vpop.permute.xlu2 %1053 }
 0x3db   : > { %v1020_v34 = vpop.permute.xlu0 %1019  ;;  %v1058_v43 = vpop.permute.xlu2 %1057 }
 0x3dc   : > { %v1078_v55 = vmul.f32 %v1073_v30, %v1058_v43  ;;  %v1043_v60 = vmul.f32 %v1029_v33, %v1020_v34  ;;  %v2970_v30 = vld [vmem:[%s3423_s6 + $0x40] sm:$0xff]  ;;  %v1204_v43 = vstv %s2291_s22  ;;  %s2307_s22 = sld [smem:[#allocation3 + $0x8]] }
 0x3de   : > { %v1047_v10 = vadd.f32 %v1043_v60, %v1015_v1 }
 0x3e3   : > { %v1022_v37 = vpop.permute.xlu1 %1021  ;;  %v1061_v0 = vpop.permute.xlu2 %1060 }
 0x3e4   : > { %v1044_v63 = vmul.f32 %v1033_v29, %v1022_v37  ;;  %v622_v29 = vld [vmem:[%s3423_s6 + $0x50] sm:$0xff] }
 0x3e5   : > { %1274 = vperm.xlu1 %2414, %v622_v29   ;;  %1225 = vperm.xlu2 %2411, %v622_v29  }
 0x3e6   : > { %v1048_v14 = vadd.f32 %v1044_v63, %v1016_v6 }
 0x3eb   : > { %v1024_v38 = vpop.permute.xlu0 %1023 }
 0x3ec   : > { %v1045_v44 = vmul.f32 %v1037_v26, %v1024_v38  ;;  %v1157_v40 = vpop.permute.xlu2 %1156 }
 0x3ed   : > { %2416 = vset.pattern.permute.xlu1 %v2550_v3  ;;  %2413 = vset.pattern.permute.xlu2 %v2549_v2 }
 0x3ee   : > { %v1049_v50 = vadd.f32 %v1045_v44, %v1017_v45  ;;  %1278 = vperm.xlu2 %2413, %v2926_v41   ;;  %1215 = vperm.xlu1 %2416, %v2970_v30  }
 0x3f3   : > { %v1026_v46 = vpop.permute.xlu1 %1025 }
 0x3f4   : > { %v1046_v48 = vmul.f32 %v1041_v21, %v1026_v46  ;;  %v1056_v49 = vpop.permute.xlu0 %1055 }
 0x3f5   : > { %v1077_v51 = vmul.f32 %v1069_v25, %v1056_v49 }
 0x3f6   : > { %v1050_v56 = vadd.f32 %v1046_v48, %v1018_v47  ;;  %1246 = vperm.xlu2 %2413, %v2917_v35   ;;  %2417 = vset.pattern.permute.xlu1 %v2552_v12  ;;  %v575_v35 = vld [vmem:[%s3421_s4 + $0x58] sm:$0xff]  ;;  %v1147_v47 = vpop.permute.xlu2 %1146 }
 0x3f7   : > { %v1081_v58 = vadd.f32 %v1077_v51, %v1049_v50  ;;  %1306 = vperm.xlu1 %2417, %v622_v29  }
 0x3f8   : > { %v1082_v61 = vadd.f32 %v1078_v55, %v1050_v56 }
 0x3f9   : > { %v1090_v9 = vmul.f32 %v1087_v59, %v1081_v58  ;;  %vm1085_vm3 = vcmp.ge.f32.partialorder %v1081_v58, 0.0 }
 0x3fa   : > { %vm1086_vm2 = vcmp.ge.f32.partialorder %v1082_v61, 0.0  ;;  %v1091_v4 = vmul.f32 %v1087_v59, %v1082_v61 }
 0x3fb   : > { %v1052_v62 = vpop.permute.xlu1 %1051  ;;  %v1094_v17 = vsel %vm1085_vm3, %v1081_v58, %v1090_v9 }
 0x3fc   : > { %v1075_v11 = vmul.f32 %v1061_v0, %v1052_v62  ;;  %v1065_v7 = vpop.permute.xlu0 %1064  ;;  %v1095_v13 = vsel %vm1086_vm2, %v1082_v61, %v1091_v4 }
 0x3fd   : > { %v1076_v15 = vmul.f32 %v1065_v7, %v1054_v36  ;;  %1124 = vmatpush.msrb.mxu0 %v1095_v13 }
 0x3fe   : > { %v1079_v16 = vadd.f32 %v1075_v11, %v1047_v10  ;;  %1242 = vperm.xlu2 %2413, %v597_v28  }
 0x3ff   : > { %v1080_v18 = vadd.f32 %v1076_v15, %v1048_v14  ;;  %1125 = vmatpush.msrb.mxu0 %v1094_v17  ;;  %2418 = vset.pattern.permute.xlu1 %v2549_v2 }
 0x400   : > { %v1088_v21 = vmul.f32 %v1087_v59, %v1079_v16  ;;  %vm1083_vm6 = vcmp.ge.f32.partialorder %v1079_v16, 0.0  ;;  %1266 = vperm.xlu1 %2418, %v2970_v30  }
 0x401   : > { %vm1084_vm5 = vcmp.ge.f32.partialorder %v1080_v18, 0.0  ;;  %v1089_v20 = vmul.f32 %v1087_v59, %v1080_v18 }
 0x402   : > { %v1092_v26 = vsel %vm1083_vm6, %v1079_v16, %v1088_v21 }
 0x403   : > { %v1093_v23 = vsel %vm1084_vm5, %v1080_v18, %v1089_v20  ;;  %v1099_v31 = vpop.permute.xlu1 %1098  ;;  %v3031_v18 = vld [vmem:[%s3422_s5 + $0x70] sm:$0xff] }
 0x404   : > { %1126 = vmatpush.msrb.mxu0 %v1093_v23 }
 0x405   : > { %v1104_v32 = vpop.permute.xlu0 %1103 }
 0x406   : > { %1127 = vmatpush.msrb.mxu0 %v1092_v26  ;;  %1270 = vperm.xlu2 %2413, %v2937_v5   ;;  %v653_v26 = vld [vmem:[%s3425_s8 + $0x28] sm:$0xff] }
 0x407   : > { %2289 = vmatmul.msk.f32.vlgmr.msrb.gmra.mxu0 %vm867_vm13, %v638_v24 }
 0x408   : > { %2421 = vset.pattern.permute.xlu1 %v2550_v3 }
 0x40d   : > { %v1142_v41 = vpop.permute.xlu0 %1141 }
 0x40e   : > { %1238 = vperm.xlu2 %2413, %v2932_v54   ;;  %v1152_v54 = vpop.permute.xlu1 %1151 }
 0x40f   : > { %2290 = vmatmul.msk.f32.gmra.mxu0 %vm867_vm13, %v639_v27  ;;  %v3040_v27 = vld [vmem:[%s3423_s6 + $0x78] sm:$0xff] }
 0x416   : > { %2419 = vset.pattern.permute.xlu2 %v2552_v12  ;;  %v1231_v0 = vpop.permute.xlu1 %1230  ;;  %v1251_v11 = vpop.permute.xlu0 %1250 }
 0x41e   : > { %v1221_v4 = vpop.permute.xlu1 %1220 }
 0x41f   : > { %v1311_v14 = vpop.permute.xlu0 %1310 }
 0x43f   : > { %v1226_v63 = vpop.permute.xlu2 %1225 }
 0x448   : > { %v1279_v1 = vpop.permute.xlu2 %1278 }
 0x450   : > { %v1247_v9 = vpop.permute.xlu2 %1246 }
 0x457   : > { %v1275_v6 = vpop.permute.xlu1 %1274 }
 0x458   : > { %v1243_v62 = vpop.permute.xlu2 %1242 }
 0x460   : > { %v1216_v10 = vpop.permute.xlu1 %1215  ;;  %v1271_v7 = vpop.permute.xlu2 %1270 }
 0x468   : > { %v1239_v15 = vpop.permute.xlu2 %1238 }
 0x469   : > { %v1307_v13 = vpop.permute.xlu1 %1306 }
 0x472   : > { %v1267_v16 = vpop.permute.xlu1 %1266 }
 0x484   : > { %v1129_v25 = vpop.f32.mrf.mxu0 }
 0x485   : > { %v1130_v34 = vadd.f32 %v1129_v25, %v1099_v31 }
 0x487   : > { %v2980_v38 = vadd.f32 %v1130_v34, %v2866_v53  ;;  %v574_v53 = vld [vmem:[%s3421_s4 + $0x50] sm:$0xff] }
 0x48c   : > { %v1132_v33 = vpop.f32.mrf.mxu0 }
 0x48d   : > { %v1133_v36 = vadd.f32 %v1132_v33, %v1104_v32 }
 0x48f   : > { %v2976_v37 = vadd.f32 %v1133_v36, %v2862_v52  ;;  %v573_v52 = vld [vmem:[%s3421_s4 + $0x48] sm:$0xff] }
 0x491   : > { %1185 = vmatpush.msrb.mxu2 %v2976_v37 }
 0x493   : > { %1186 = vmatpush.msrb.mxu2 %v2980_v38 }
 0x494   : > { %2293 = vmatmul.msk.f32.vlgmr.msrb.gmra.mxu2 %vm534_vm4, %v572_v39  ;;  %v3046_v39 = vld [vmem:[%s3422_s5 + $0x60] sm:$0xff] }
 0x49c   : > { %2294 = vmatmul.msk.f32.gmra.mxu2 %vm534_vm4, %v573_v52  ;;  %v3051_v52 = vld [vmem:[%s3423_s6 + $0x68] sm:$0xff] }
 0x4a4   : > { %2295 = vmatmul.msk.f32.gmra.mxu2 %vm534_vm4, %v574_v53 }
 0x4ac   : > { %2296 = vmatmul.msk.f32.gmra.mxu2 %vm534_vm4, %v575_v35 }
 0x517   : > { %v1188_v42 = vpop.f32.mrf.mxu2 }
 0x518   : > { %v1189_v44 = vadd.f32 %v1188_v42, %v1142_v41 }
 0x51a   : > { %v1205_v45 = vmul.f32 %v1204_v43, %v1189_v44  ;;  %vm1200_vm7 = vcmp.ge.f32.partialorder %v1189_v44, 0.0 }
 0x51c   : > { %v3005_v46 = vsel %vm1200_vm7, %v1189_v44, %v1205_v45 }
 0x51d   : > { %1257 = vrot.lane.b32.xlu0 %v3005_v46, %s3435_s16  ;;  %v1233_v53 = vmul.f32 %v1216_v10, %v3005_v46  ;;  %v603_v10 = vld [vmem:[%s3422_s5 + $0x78] sm:$0xff] }
 0x51f   : > { %v1191_v48 = vpop.f32.mrf.mxu2 }
 0x520   : > { %v1192_v49 = vadd.f32 %v1191_v48, %v1147_v47 }
 0x522   : > { %v1206_v50 = vmul.f32 %v1204_v43, %v1192_v49  ;;  %vm1201_vm8 = vcmp.ge.f32.partialorder %v1192_v49, 0.0 }
 0x524   : > { %v3009_v51 = vsel %vm1201_vm8, %v1192_v49, %v1206_v50  ;;  %v1253_v49 = vadd.f32 %v1239_v15, %v1233_v53 }
 0x525   : > { %1291 = vrot.lane.b32.xlu2 %v3009_v51, %s3433_s25  ;;  %1259 = vrot.lane.b32.xlu1 %v3009_v51, %s3435_s16  ;;  %v1234_v41 = vmul.f32 %v1221_v4, %v3009_v51 }
 0x527   : > { %v1194_v8 = vpop.f32.mrf.mxu2 }
 0x528   : > { %v1195_v55 = vadd.f32 %v1194_v8, %v1152_v54  ;;  %v1254_v8 = vadd.f32 %v1243_v62, %v1234_v41  ;;  %v641_v62 = vld [vmem:[%s3424_s7 + $0x28] sm:$0xff] }
 0x52a   : > { %v1207_v56 = vmul.f32 %v1204_v43, %v1195_v55  ;;  %vm1202_vm9 = vcmp.ge.f32.partialorder %v1195_v55, 0.0 }
 0x52c   : > { %v1211_v57 = vsel %vm1202_vm9, %v1195_v55, %v1207_v56 }
 0x52d   : > { %1261 = vrot.lane.b32.xlu0 %v1211_v57, %s3435_s16  ;;  %v1235_v24 = vmul.f32 %v1226_v63, %v1211_v57 }
 0x52f   : > { %v1197_v58 = vpop.f32.mrf.mxu2  ;;  %v1255_v25 = vadd.f32 %v1247_v9, %v1235_v24  ;;  %v640_v9 = vld [vmem:[%s3424_s7 + $0x20] sm:$0xff]  ;;  %v579_v24 = vld [vmem:[%s3421_s4 + $0x78] sm:$0xff] }
 0x530   : > { %v1198_v59 = vadd.f32 %v1197_v58, %v1157_v40 }
 0x532   : > { %v1208_v60 = vmul.f32 %v1204_v43, %v1198_v59  ;;  %vm1203_vm10 = vcmp.ge.f32.partialorder %v1198_v59, 0.0  ;;  %v1325_v43 = vstv %s2292_s14  ;;  %s2300_s14 = sld [smem:[#allocation3 + $0x7]] }
 0x534   : > { %v1212_v61 = vsel %vm1203_vm10, %v1198_v59, %v1208_v60 }
 0x535   : > { %1295 = vrot.lane.b32.xlu2 %v1212_v61, %s3433_s25  ;;  %1263 = vrot.lane.b32.xlu1 %v1212_v61, %s3435_s16  ;;  %v1236_v19 = vmul.f32 %v1231_v0, %v1212_v61  ;;  %s2299_s16 = sld [smem:[#allocation3 + $0x6]] }
 0x536   : > { %1293 = vrot.lane.b32.xlu0 %v1211_v57, %s3433_s25 }
 0x537   : > { %v1256_v31 = vadd.f32 %v1251_v11, %v1236_v19  ;;  %v601_v11 = vld [vmem:[%s3422_s5 + $0x68] sm:$0xff] }
 0x53d   : > { %1289 = vrot.lane.b32.xlu1 %v3005_v46, %s3433_s25  ;;  %1298 = vperm.xlu2 %2419, %v2970_v30   ;;  %s3445_s25 = smov 120  }
 0x53e   : > { %1302 = vperm.xlu0 %2415, %v2937_v5   ;;  %v652_v5 = vld [vmem:[%s3425_s8 + $0x20] sm:$0xff] }
 0x545   : > { %2422 = vset.pattern.permute.xlu2 %v2550_v3  ;;  %1336 = vperm.xlu1 %2421, %v652_v5  }
 0x546   : > { %2420 = vset.pattern.permute.xlu0 %v2550_v3  ;;  %1394 = vperm.xlu2 %2422, %v603_v10  }
 0x547   : > { %1341 = vperm.xlu0 %2420, %v653_v26  }
 0x54d   : > { %1389 = vperm.xlu1 %2421, %v3031_v18  }
 0x54e   : > { %1384 = vperm.xlu2 %2422, %v601_v11  }
 0x54f   : > { %1379 = vperm.xlu0 %2420, %v3046_v39  }
 0x555   : > { %1468 = vperm.xlu1 %2421, %v3040_v27  }
 0x557   : > { %2423 = vset.pattern.permute.xlu0 %v2549_v2 }
 0x558   : > { %1488 = vperm.xlu0 %2423, %v603_v10  }
 0x55d   : > { %1458 = vperm.xlu1 %2421, %v3051_v52  }
 0x560   : > { %2426 = vset.pattern.permute.xlu0 %v2552_v12 }
 0x561   : > { %1548 = vperm.xlu0 %2426, %v3040_v27  }
 0x565   : > { %2425 = vset.pattern.permute.xlu1 %v2549_v2 }
 0x57f   : > { %v1292_v20 = vpop.permute.xlu2 %1291 }
 0x58f   : > { %v1258_v17 = vpop.permute.xlu0 %1257  ;;  %v1296_v28 = vpop.permute.xlu2 %1295 }
 0x590   : > { %v1316_v35 = vmul.f32 %v1311_v14, %v1296_v28  ;;  %v1281_v44 = vmul.f32 %v1267_v16, %v1258_v17  ;;  %v1442_v28 = vstv %s2299_s16  ;;  %s2316_s16 = sld [smem:[#allocation3 + $0xb]] }
 0x592   : > { %v1285_v55 = vadd.f32 %v1281_v44, %v1253_v49 }
 0x597   : > { %v1260_v21 = vpop.permute.xlu1 %1259  ;;  %v1299_v48 = vpop.permute.xlu2 %1298 }
 0x598   : > { %v1282_v47 = vmul.f32 %v1271_v7, %v1260_v21  ;;  %v626_v7 = vld [vmem:[%s3423_s6 + $0x70] sm:$0xff] }
 0x599   : > { %1463 = vperm.xlu2 %2422, %v626_v7   ;;  %1512 = vperm.xlu1 %2425, %v626_v7  }
 0x59a   : > { %v1286_v58 = vadd.f32 %v1282_v47, %v1254_v8 }
 0x59f   : > { %v1262_v23 = vpop.permute.xlu0 %1261 }
 0x5a0   : > { %v1283_v29 = vmul.f32 %v1275_v6, %v1262_v23  ;;  %v576_v23 = vld [vmem:[%s3421_s4 + $0x60] sm:$0xff]  ;;  %v1395_v26 = vpop.permute.xlu2 %1394 }
 0x5a1   : > { %2424 = vset.pattern.permute.xlu2 %v2549_v2  ;;  %2427 = vset.pattern.permute.xlu1 %v2550_v3 }
 0x5a2   : > { %v1287_v34 = vadd.f32 %v1283_v29, %v1255_v25  ;;  %1516 = vperm.xlu2 %2424, %v3040_v27  }
 0x5a7   : > { %v1264_v30 = vpop.permute.xlu1 %1263 }
 0x5a8   : > { %v1284_v32 = vmul.f32 %v1279_v1, %v1264_v30  ;;  %v1294_v33 = vpop.permute.xlu0 %1293 }
 0x5a9   : > { %v1315_v36 = vmul.f32 %v1307_v13, %v1294_v33  ;;  %v3081_v13 = vld [vmem:[%s3423_s6 + $0x60] sm:$0xff] }
 0x5aa   : > { %v1288_v40 = vadd.f32 %v1284_v32, %v1256_v31  ;;  %1453 = vperm.xlu1 %2427, %v3081_v13   ;;  %1484 = vperm.xlu2 %2424, %v3031_v18   ;;  %v1385_v31 = vpop.permute.xlu2 %1384 }
 0x5ab   : > { %v1319_v42 = vadd.f32 %v1315_v36, %v1287_v34 }
 0x5ac   : > { %v1320_v45 = vadd.f32 %v1316_v35, %v1288_v40 }
 0x5ad   : > { %v1328_v54 = vmul.f32 %v1325_v43, %v1319_v42  ;;  %vm1323_vm12 = vcmp.ge.f32.partialorder %v1319_v42, 0.0 }
 0x5ae   : > { %vm1324_vm11 = vcmp.ge.f32.partialorder %v1320_v45, 0.0  ;;  %v1329_v50 = vmul.f32 %v1325_v43, %v1320_v45 }
 0x5af   : > { %v1290_v46 = vpop.permute.xlu1 %1289  ;;  %v1332_v61 = vsel %vm1323_vm12, %v1319_v42, %v1328_v54 }
 0x5b0   : > { %v1313_v56 = vmul.f32 %v1299_v48, %v1290_v46  ;;  %v1303_v51 = vpop.permute.xlu0 %1302  ;;  %v1333_v57 = vsel %vm1324_vm11, %v1320_v45, %v1329_v50 }
 0x5b1   : > { %v1314_v59 = vmul.f32 %v1303_v51, %v1292_v20  ;;  %1362 = vmatpush.msra.mxu0 %v1333_v57 }
 0x5b2   : > { %v1317_v60 = vadd.f32 %v1313_v56, %v1285_v55  ;;  %2428 = vset.pattern.permute.xlu1 %v2552_v12  ;;  %1480 = vperm.xlu2 %2424, %v601_v11  }
 0x5b3   : > { %v1318_v63 = vadd.f32 %v1314_v59, %v1286_v58  ;;  %1363 = vmatpush.msra.mxu0 %v1332_v61  ;;  %1544 = vperm.xlu1 %2428, %v626_v7  }
 0x5b4   : > { %v1326_v1 = vmul.f32 %v1325_v43, %v1317_v60  ;;  %vm1321_vm15 = vcmp.ge.f32.partialorder %v1317_v60, 0.0 }
 0x5b5   : > { %vm1322_vm14 = vcmp.ge.f32.partialorder %v1318_v63, 0.0  ;;  %v1327_v0 = vmul.f32 %v1325_v43, %v1318_v63 }
 0x5b6   : > { %v1330_v6 = vsel %vm1321_vm15, %v1317_v60, %v1326_v1 }
 0x5b7   : > { %v1331_v4 = vsel %vm1322_vm14, %v1318_v63, %v1327_v0  ;;  %v1337_v5 = vpop.permute.xlu1 %1336 }
 0x5b8   : > { %1364 = vmatpush.msra.mxu0 %v1331_v4 }
 0x5b9   : > { %v1342_v15 = vpop.permute.xlu0 %1341 }
 0x5ba   : > { %1365 = vmatpush.msra.mxu0 %v1330_v6  ;;  %1508 = vperm.xlu2 %2424, %v3051_v52   ;;  %v655_v6 = vld [vmem:[%s3425_s8 + $0x38] sm:$0xff] }
 0x5bb   : > { %2297 = vmatmul.msk.f32.vlgmr.msra.gmra.mxu0 %vm867_vm13, %v640_v9  ;;  %2429 = vset.pattern.permute.xlu1 %v2549_v2  ;;  %v3145_v9 = vld [vmem:[%s3422_s5 + $0x90] sm:$0xff] }
 0x5bc   : > { %1504 = vperm.xlu1 %2429, %v3081_v13  }
 0x5c1   : > { %v1380_v27 = vpop.permute.xlu0 %1379 }
 0x5c2   : > { %1476 = vperm.xlu2 %2424, %v3046_v39   ;;  %v1390_v39 = vpop.permute.xlu1 %1389 }
 0x5c3   : > { %2298 = vmatmul.msk.f32.gmra.mxu0 %vm867_vm13, %v641_v62 }
 0x5c4   : > { %2432 = vset.pattern.permute.xlu1 %v2550_v3 }
 0x5ca   : > { %2430 = vset.pattern.permute.xlu2 %v2552_v12  ;;  %v1469_v48 = vpop.permute.xlu1 %1468  ;;  %v1489_v56 = vpop.permute.xlu0 %1488 }
 0x5d2   : > { %v1459_v50 = vpop.permute.xlu1 %1458 }
 0x5d3   : > { %v1549_v58 = vpop.permute.xlu0 %1548 }
 0x5f3   : > { %v1464_v47 = vpop.permute.xlu2 %1463 }
 0x5fc   : > { %v1517_v49 = vpop.permute.xlu2 %1516 }
 0x604   : > { %v1485_v54 = vpop.permute.xlu2 %1484 }
 0x60b   : > { %v1513_v8 = vpop.permute.xlu1 %1512 }
 0x60c   : > { %v1481_v46 = vpop.permute.xlu2 %1480 }
 0x614   : > { %v1509_v51 = vpop.permute.xlu2 %1508 }
 0x61c   : > { %v1454_v55 = vpop.permute.xlu1 %1453  ;;  %v1477_v59 = vpop.permute.xlu2 %1476 }
 0x625   : > { %v1545_v57 = vpop.permute.xlu1 %1544 }
 0x62e   : > { %v1505_v60 = vpop.permute.xlu1 %1504 }
 0x638   : > { %v1367_v14 = vpop.f32.mrf.mxu0 }
 0x639   : > { %v1368_v17 = vadd.f32 %v1367_v14, %v1337_v5 }
 0x63b   : > { %v3096_v18 = vadd.f32 %v1368_v17, %v2980_v38  ;;  %v578_v38 = vld [vmem:[%s3421_s4 + $0x70] sm:$0xff] }
 0x640   : > { %v1370_v16 = vpop.f32.mrf.mxu0 }
 0x641   : > { %v1371_v20 = vadd.f32 %v1370_v16, %v1342_v15 }
 0x643   : > { %v3090_v21 = vadd.f32 %v1371_v20, %v2976_v37  ;;  %v577_v37 = vld [vmem:[%s3421_s4 + $0x68] sm:$0xff]  ;;  %v631_v20 = vld [vmem:[%s3423_s6 + $0x98] sm:$0xff] }
 0x645   : > { %1423 = vmatpush.msrb.mxu1 %v3090_v21 }
 0x647   : > { %1424 = vmatpush.msrb.mxu1 %v3096_v18 }
 0x648   : > { %2301 = vmatmul.msk.f32.vlgmr.msrb.gmra.mxu1 %vm534_vm4, %v576_v23  ;;  %v3157_v23 = vld [vmem:[%s3422_s5 + $0x80] sm:$0xff] }
 0x650   : > { %2302 = vmatmul.msk.f32.gmra.mxu1 %vm534_vm4, %v577_v37 }
 0x658   : > { %2303 = vmatmul.msk.f32.gmra.mxu1 %vm534_vm4, %v578_v38 }
 0x660   : > { %2304 = vmatmul.msk.f32.gmra.mxu1 %vm534_vm4, %v579_v24 }
 0x6c5   : > { %v1426_v19 = vpop.f32.mrf.mxu1 }
 0x6c6   : > { %v1427_v29 = vadd.f32 %v1426_v19, %v1380_v27  ;;  %v1563_v19 = vstv %s2300_s14  ;;  %s2315_s14 = sld [smem:[#allocation3 + $0xa]] }
 0x6c8   : > { %v1443_v25 = vmul.f32 %v1442_v28, %v1427_v29  ;;  %vm1438_vm0 = vcmp.ge.f32.partialorder %v1427_v29, 0.0 }
 0x6ca   : > { %v3119_v30 = vsel %vm1438_vm0, %v1427_v29, %v1443_v25 }
 0x6cb   : > { %1495 = vrot.lane.b32.xlu0 %v3119_v30, %s3443_s21  ;;  %v1471_v37 = vmul.f32 %v1454_v55, %v3119_v30  ;;  %v607_v55 = vld [vmem:[%s3422_s5 + $0x98] sm:$0xff] }
 0x6cd   : > { %v1429_v32 = vpop.f32.mrf.mxu1 }
 0x6ce   : > { %v1430_v33 = vadd.f32 %v1429_v32, %v1385_v31  ;;  %v1491_v32 = vadd.f32 %v1477_v59, %v1471_v37 }
 0x6d0   : > { %v1444_v34 = vmul.f32 %v1442_v28, %v1430_v33  ;;  %vm1439_vm1 = vcmp.ge.f32.partialorder %v1430_v33, 0.0 }
 0x6d2   : > { %v3123_v36 = vsel %vm1439_vm1, %v1430_v33, %v1444_v34 }
 0x6d3   : > { %1529 = vrot.lane.b32.xlu2 %v3123_v36, %s2554_s23  ;;  %1497 = vrot.lane.b32.xlu1 %v3123_v36, %s3443_s21 }
 0x6d5   : > { %v1432_v53 = vpop.f32.mrf.mxu1 }
 0x6d6   : > { %v1433_v35 = vadd.f32 %v1432_v53, %v1390_v39 }
 0x6d8   : > { %v1445_v40 = vmul.f32 %v1442_v28, %v1433_v35  ;;  %vm1440_vm2 = vcmp.ge.f32.partialorder %v1433_v35, 0.0 }
 0x6da   : > { %v1449_v41 = vsel %vm1440_vm2, %v1433_v35, %v1445_v40 }
 0x6db   : > { %1499 = vrot.lane.b32.xlu0 %v1449_v41, %s3443_s21  ;;  %v1473_v4 = vmul.f32 %v1464_v47, %v1449_v41 }
 0x6dd   : > { %v1435_v42 = vpop.f32.mrf.mxu1  ;;  %v1493_v7 = vadd.f32 %v1485_v54, %v1473_v4  ;;  %v642_v54 = vld [vmem:[%s3424_s7 + $0x30] sm:$0xff]  ;;  %v580_v4 = vld [vmem:[%s3421_s4 + $0x80] sm:$0xff] }
 0x6de   : > { %v1436_v43 = vadd.f32 %v1435_v42, %v1395_v26  ;;  %v1472_v26 = vmul.f32 %v1459_v50, %v3123_v36 }
 0x6e0   : > { %v1446_v44 = vmul.f32 %v1442_v28, %v1436_v43  ;;  %vm1441_vm3 = vcmp.ge.f32.partialorder %v1436_v43, 0.0  ;;  %v1492_v39 = vadd.f32 %v1481_v46, %v1472_v26  ;;  %v643_v46 = vld [vmem:[%s3424_s7 + $0x38] sm:$0xff] }
 0x6e2   : > { %v1450_v45 = vsel %vm1441_vm3, %v1436_v43, %v1446_v44  ;;  %v3165_v43 = vld [vmem:[%s3423_s6 + $0x88] sm:$0xff] }
 0x6e3   : > { %1533 = vrot.lane.b32.xlu2 %v1450_v45, %s2554_s23  ;;  %1501 = vrot.lane.b32.xlu1 %v1450_v45, %s3443_s21  ;;  %v1474_v62 = vmul.f32 %v1469_v48, %v1450_v45 }
 0x6e4   : > { %1531 = vrot.lane.b32.xlu0 %v1449_v41, %s2554_s23 }
 0x6e5   : > { %v1494_v14 = vadd.f32 %v1489_v56, %v1474_v62  ;;  %v605_v56 = vld [vmem:[%s3422_s5 + $0x88] sm:$0xff] }
 0x6eb   : > { %1527 = vrot.lane.b32.xlu1 %v3119_v30, %s2554_s23  ;;  %1536 = vperm.xlu2 %2430, %v3081_v13  }
 0x6ec   : > { %1540 = vperm.xlu0 %2426, %v3051_v52   ;;  %v654_v52 = vld [vmem:[%s3425_s8 + $0x30] sm:$0xff] }
 0x6f3   : > { %2433 = vset.pattern.permute.xlu2 %v2550_v3  ;;  %1574 = vperm.xlu1 %2432, %v654_v52  }
 0x6f4   : > { %2431 = vset.pattern.permute.xlu0 %v2550_v3  ;;  %1632 = vperm.xlu2 %2433, %v607_v55  }
 0x6f5   : > { %1579 = vperm.xlu0 %2431, %v655_v6  }
 0x6fb   : > { %1627 = vperm.xlu1 %2432, %v3145_v9  }
 0x6fc   : > { %1622 = vperm.xlu2 %2433, %v605_v56  }
 0x6fd   : > { %1617 = vperm.xlu0 %2431, %v3157_v23  }
 0x703   : > { %1706 = vperm.xlu1 %2432, %v631_v20  }
 0x705   : > { %2434 = vset.pattern.permute.xlu0 %v2549_v2 }
 0x706   : > { %1726 = vperm.xlu0 %2434, %v607_v55  }
 0x70b   : > { %1696 = vperm.xlu1 %2432, %v3165_v43  }
 0x70e   : > { %2437 = vset.pattern.permute.xlu0 %v2552_v12 }
 0x70f   : > { %1786 = vperm.xlu0 %2437, %v631_v20  }
 0x713   : > { %2436 = vset.pattern.permute.xlu1 %v2549_v2 }
 0x72d   : > { %v1530_v63 = vpop.permute.xlu2 %1529 }
 0x73d   : > { %v1496_v61 = vpop.permute.xlu0 %1495  ;;  %v1534_v10 = vpop.permute.xlu2 %1533 }
 0x73e   : > { %v1554_v38 = vmul.f32 %v1549_v58, %v1534_v10  ;;  %v1519_v28 = vmul.f32 %v1505_v60, %v1496_v61 }
 0x740   : > { %v1523_v30 = vadd.f32 %v1519_v28, %v1491_v32 }
 0x745   : > { %v1498_v0 = vpop.permute.xlu1 %1497  ;;  %v1537_v31 = vpop.permute.xlu2 %1536 }
 0x746   : > { %v1520_v25 = vmul.f32 %v1509_v51, %v1498_v0  ;;  %v630_v51 = vld [vmem:[%s3423_s6 + $0x90] sm:$0xff] }
 0x747   : > { %1701 = vperm.xlu2 %2433, %v630_v51   ;;  %1750 = vperm.xlu1 %2436, %v630_v51  }
 0x748   : > { %v1524_v41 = vadd.f32 %v1520_v25, %v1492_v39 }
 0x74d   : > { %v1500_v1 = vpop.permute.xlu0 %1499 }
 0x74e   : > { %v1521_v11 = vmul.f32 %v1513_v8, %v1500_v1  ;;  %v1633_v6 = vpop.permute.xlu2 %1632 }
 0x74f   : > { %2435 = vset.pattern.permute.xlu2 %v2549_v2  ;;  %2438 = vset.pattern.permute.xlu1 %v2550_v3 }
 0x750   : > { %v1525_v16 = vadd.f32 %v1521_v11, %v1493_v7  ;;  %1754 = vperm.xlu2 %2435, %v631_v20   ;;  %v1680_v11 = vstv %s2307_s22 }
 0x755   : > { %v1502_v13 = vpop.permute.xlu1 %1501 }
 0x756   : > { %v1522_v5 = vmul.f32 %v1517_v49, %v1502_v13  ;;  %v1532_v15 = vpop.permute.xlu0 %1531 }
 0x757   : > { %v1553_v17 = vmul.f32 %v1545_v57, %v1532_v15  ;;  %v3191_v57 = vld [vmem:[%s3423_s6 + $0x80] sm:$0xff] }
 0x758   : > { %v1526_v24 = vadd.f32 %v1522_v5, %v1494_v14  ;;  %1691 = vperm.xlu1 %2438, %v3191_v57   ;;  %1722 = vperm.xlu2 %2435, %v3145_v9   ;;  %v583_v9 = vld [vmem:[%s3421_s4 + $0x98] sm:$0xff]  ;;  %v1623_v5 = vpop.permute.xlu2 %1622 }
 0x759   : > { %v1557_v27 = vadd.f32 %v1553_v17, %v1525_v16 }
 0x75a   : > { %v1558_v29 = vadd.f32 %v1554_v38, %v1526_v24 }
 0x75b   : > { %v1566_v34 = vmul.f32 %v1563_v19, %v1557_v27  ;;  %vm1561_vm6 = vcmp.ge.f32.partialorder %v1557_v27, 0.0 }
 0x75c   : > { %vm1562_vm5 = vcmp.ge.f32.partialorder %v1558_v29, 0.0  ;;  %v1567_v33 = vmul.f32 %v1563_v19, %v1558_v29 }
 0x75d   : > { %v1528_v53 = vpop.permute.xlu1 %1527  ;;  %v1570_v45 = vsel %vm1561_vm6, %v1557_v27, %v1566_v34 }
 0x75e   : > { %v1551_v35 = vmul.f32 %v1537_v31, %v1528_v53  ;;  %v1541_v40 = vpop.permute.xlu0 %1540  ;;  %v1571_v36 = vsel %vm1562_vm5, %v1558_v29, %v1567_v33 }
 0x75f   : > { %v1552_v42 = vmul.f32 %v1541_v40, %v1530_v63  ;;  %1600 = vmatpush.msrb.mxu3 %v1571_v36 }
 0x760   : > { %v1555_v44 = vadd.f32 %v1551_v35, %v1523_v30  ;;  %2439 = vset.pattern.permute.xlu1 %v2552_v12  ;;  %1718 = vperm.xlu2 %2435, %v605_v56  }
 0x761   : > { %v1556_v47 = vadd.f32 %v1552_v42, %v1524_v41  ;;  %1601 = vmatpush.msrb.mxu3 %v1570_v45  ;;  %1782 = vperm.xlu1 %2439, %v630_v51  }
 0x762   : > { %v1564_v49 = vmul.f32 %v1563_v19, %v1555_v44  ;;  %vm1559_vm8 = vcmp.ge.f32.partialorder %v1555_v44, 0.0 }
 0x763   : > { %vm1560_vm7 = vcmp.ge.f32.partialorder %v1556_v47, 0.0  ;;  %v1565_v48 = vmul.f32 %v1563_v19, %v1556_v47 }
 0x764   : > { %v1568_v8 = vsel %vm1559_vm8, %v1555_v44, %v1564_v49 }
 0x765   : > { %v1569_v50 = vsel %vm1560_vm7, %v1556_v47, %v1565_v48  ;;  %v1575_v59 = vpop.permute.xlu1 %1574  ;;  %v656_v47 = vld [vmem:[%s3425_s8 + $0x40] sm:$0xff] }
 0x766   : > { %1602 = vmatpush.msrb.mxu3 %v1569_v50 }
 0x767   : > { %v1580_v60 = vpop.permute.xlu0 %1579 }
 0x768   : > { %1603 = vmatpush.msrb.mxu3 %v1568_v8  ;;  %1746 = vperm.xlu2 %2435, %v3165_v43   ;;  %v657_v8 = vld [vmem:[%s3425_s8 + $0x48] sm:$0xff] }
 0x769   : > { %2305 = vmatmul.msk.f32.vlgmr.msrb.gmra.mxu3 %vm867_vm13, %v642_v54  ;;  %2440 = vset.pattern.permute.xlu1 %v2549_v2  ;;  %v3254_v54 = vld [vmem:[%s3422_s5 + $0xb0] sm:$0xff] }
 0x76a   : > { %1742 = vperm.xlu1 %2440, %v3191_v57  }
 0x76f   : > { %v1618_v62 = vpop.permute.xlu0 %1617 }
 0x770   : > { %1714 = vperm.xlu2 %2435, %v3157_v23   ;;  %v1628_v23 = vpop.permute.xlu1 %1627 }
 0x771   : > { %2306 = vmatmul.msk.f32.gmra.mxu3 %vm867_vm13, %v643_v46 }
 0x772   : > { %2443 = vset.pattern.permute.xlu1 %v2550_v3 }
 0x778   : > { %2441 = vset.pattern.permute.xlu2 %v2552_v12  ;;  %v1707_v31 = vpop.permute.xlu1 %1706  ;;  %v1727_v35 = vpop.permute.xlu0 %1726 }
 0x780   : > { %v1697_v33 = vpop.permute.xlu1 %1696 }
 0x781   : > { %v1787_v41 = vpop.permute.xlu0 %1786 }
 0x7a1   : > { %v1702_v25 = vpop.permute.xlu2 %1701 }
 0x7aa   : > { %v1755_v32 = vpop.permute.xlu2 %1754 }
 0x7b2   : > { %v1723_v34 = vpop.permute.xlu2 %1722 }
 0x7b9   : > { %v1751_v39 = vpop.permute.xlu1 %1750 }
 0x7ba   : > { %v1719_v53 = vpop.permute.xlu2 %1718 }
 0x7c2   : > { %v1747_v40 = vpop.permute.xlu2 %1746 }
 0x7ca   : > { %v1692_v30 = vpop.permute.xlu1 %1691  ;;  %v1715_v42 = vpop.permute.xlu2 %1714 }
 0x7d3   : > { %v1783_v36 = vpop.permute.xlu1 %1782 }
 0x7dc   : > { %v1743_v44 = vpop.permute.xlu1 %1742 }
 0x7ec   : > { %v1605_v58 = vpop.f32.mrf.mxu3 }
 0x7ed   : > { %v1606_v52 = vadd.f32 %v1605_v58, %v1575_v59 }
 0x7ef   : > { %v3204_v1 = vadd.f32 %v1606_v52, %v3096_v18  ;;  %v582_v18 = vld [vmem:[%s3421_s4 + $0x90] sm:$0xff] }
 0x7f4   : > { %v1608_v61 = vpop.f32.mrf.mxu3 }
 0x7f5   : > { %v1609_v63 = vadd.f32 %v1608_v61, %v1580_v60 }
 0x7f7   : > { %v3199_v0 = vadd.f32 %v1609_v63, %v3090_v21  ;;  %v581_v21 = vld [vmem:[%s3421_s4 + $0x88] sm:$0xff]  ;;  %v3263_v63 = vld [vmem:[%s3422_s5 + $0xa0] sm:$0xff] }
 0x7f9   : > { %1661 = vmatpush.msrb.mxu0 %v3199_v0 }
 0x7fb   : > { %1662 = vmatpush.msrb.mxu0 %v3204_v1 }
 0x7fc   : > { %2309 = vmatmul.msk.f32.vlgmr.msrb.gmra.mxu0 %vm534_vm4, %v580_v4 }
 0x804   : > { %2310 = vmatmul.msk.f32.gmra.mxu0 %vm534_vm4, %v581_v21 }
 0x80c   : > { %2311 = vmatmul.msk.f32.gmra.mxu0 %vm534_vm4, %v582_v18 }
 0x814   : > { %2312 = vmatmul.msk.f32.gmra.mxu0 %vm534_vm4, %v583_v9 }
 0x879   : > { %v1664_v10 = vpop.f32.mrf.mxu0 }
 0x87a   : > { %v1665_v7 = vadd.f32 %v1664_v10, %v1618_v62  ;;  %v1801_v62 = vstv %s2308_s17  ;;  %v635_v10 = vld [vmem:[%s3423_s6 + $0xb8] sm:$0xff]  ;;  %s2195_s17 = scalar_lea.hbm %s3430_s13, %s2651_s11 }
 0x87c   : > { %v1681_v13 = vmul.f32 %v1680_v11, %v1665_v7  ;;  %vm1676_vm9 = vcmp.ge.f32.partialorder %v1665_v7, 0.0 }
 0x87e   : > { %v3228_v14 = vsel %vm1676_vm9, %v1665_v7, %v1681_v13 }
 0x87f   : > { %1733 = vrot.lane.b32.xlu0 %v3228_v14, %s2554_s23  ;;  %v1709_v4 = vmul.f32 %v1692_v30, %v3228_v14  ;;  %v611_v30 = vld [vmem:[%s3422_s5 + $0xb8] sm:$0xff] }
 0x881   : > { %v1667_v15 = vpop.f32.mrf.mxu0 }
 0x882   : > { %v1668_v16 = vadd.f32 %v1667_v15, %v1623_v5  ;;  %v1729_v15 = vadd.f32 %v1715_v42, %v1709_v4 }
 0x884   : > { %vm1677_vm10 = vcmp.ge.f32.partialorder %v1668_v16, 0.0  ;;  %v1682_v17 = vmul.f32 %v1680_v11, %v1668_v16 }
 0x886   : > { %v3232_v20 = vsel %vm1677_vm10, %v1668_v16, %v1682_v17 }
 0x887   : > { %1767 = vrot.lane.b32.xlu2 %v3232_v20, %s3444_s26  ;;  %1735 = vrot.lane.b32.xlu1 %v3232_v20, %s2554_s23  ;;  %v1710_v9 = vmul.f32 %v1697_v33, %v3232_v20 }
 0x889   : > { %v1670_v37 = vpop.f32.mrf.mxu0  ;;  %v1730_v17 = vadd.f32 %v1719_v53, %v1710_v9  ;;  %v645_v53 = vld [vmem:[%s3424_s7 + $0x48] sm:$0xff] }
 0x88a   : > { %v1671_v38 = vadd.f32 %v1670_v37, %v1628_v23 }
 0x88c   : > { %v1683_v24 = vmul.f32 %v1680_v11, %v1671_v38  ;;  %vm1678_vm11 = vcmp.ge.f32.partialorder %v1671_v38, 0.0 }
 0x88e   : > { %v1687_v26 = vsel %vm1678_vm11, %v1671_v38, %v1683_v24 }
 0x88f   : > { %1737 = vrot.lane.b32.xlu0 %v1687_v26, %s2554_s23  ;;  %v1711_v50 = vmul.f32 %v1702_v25, %v1687_v26  ;;  %v3274_v25 = vld [vmem:[%s3423_s6 + $0xa8] sm:$0xff] }
 0x891   : > { %v1673_v27 = vpop.f32.mrf.mxu0  ;;  %v1731_v51 = vadd.f32 %v1723_v34, %v1711_v50  ;;  %v644_v34 = vld [vmem:[%s3424_s7 + $0x40] sm:$0xff] }
 0x892   : > { %v1674_v19 = vadd.f32 %v1673_v27, %v1633_v6  ;;  %v584_v50 = vld [vmem:[%s3421_s4 + $0xa0] sm:$0xff] }
 0x894   : > { %vm1679_vm12 = vcmp.ge.f32.partialorder %v1674_v19, 0.0  ;;  %v1684_v28 = vmul.f32 %v1680_v11, %v1674_v19 }
 0x896   : > { %v1688_v29 = vsel %vm1679_vm12, %v1674_v19, %v1684_v28 }
 0x897   : > { %1771 = vrot.lane.b32.xlu2 %v1688_v29, %s3444_s26  ;;  %1739 = vrot.lane.b32.xlu1 %v1688_v29, %s2554_s23  ;;  %v1712_v46 = vmul.f32 %v1707_v31, %v1688_v29 }
 0x898   : > { %1769 = vrot.lane.b32.xlu0 %v1687_v26, %s3444_s26 }
 0x899   : > { %v1732_v58 = vadd.f32 %v1727_v35, %v1712_v46  ;;  %v609_v35 = vld [vmem:[%s3422_s5 + $0xa8] sm:$0xff] }
 0x89f   : > { %1765 = vrot.lane.b32.xlu1 %v3228_v14, %s3444_s26  ;;  %1774 = vperm.xlu2 %2441, %v3191_v57  }
 0x8a0   : > { %1778 = vperm.xlu0 %2437, %v3165_v43  }
 0x8a7   : > { %2444 = vset.pattern.permute.xlu2 %v2550_v3  ;;  %1812 = vperm.xlu1 %2443, %v656_v47  }
 0x8a8   : > { %2442 = vset.pattern.permute.xlu0 %v2550_v3  ;;  %1870 = vperm.xlu2 %2444, %v611_v30  }
 0x8a9   : > { %1817 = vperm.xlu0 %2442, %v657_v8  }
 0x8af   : > { %1865 = vperm.xlu1 %2443, %v3254_v54  }
 0x8b0   : > { %1860 = vperm.xlu2 %2444, %v609_v35  }
 0x8b1   : > { %1855 = vperm.xlu0 %2442, %v3263_v63  }
 0x8b7   : > { %1944 = vperm.xlu1 %2443, %v635_v10  }
 0x8b9   : > { %2445 = vset.pattern.permute.xlu0 %v2549_v2 }
 0x8ba   : > { %1964 = vperm.xlu0 %2445, %v611_v30  }
 0x8bf   : > { %1934 = vperm.xlu1 %2443, %v3274_v25  }
 0x8c2   : > { %2448 = vset.pattern.permute.xlu0 %v2552_v12 }
 0x8c3   : > { %2024 = vperm.xlu0 %2448, %v635_v10  }
 0x8c7   : > { %2447 = vset.pattern.permute.xlu1 %v2549_v2 }
 0x8e1   : > { %v1768_v43 = vpop.permute.xlu2 %1767 }
 0x8f1   : > { %v1734_v45 = vpop.permute.xlu0 %1733  ;;  %v1772_v55 = vpop.permute.xlu2 %1771 }
 0x8f2   : > { %v1792_v21 = vmul.f32 %v1787_v41, %v1772_v55  ;;  %v1757_v11 = vmul.f32 %v1743_v44, %v1734_v45  ;;  %v632_v41 = vld [vmem:[%s3423_s6 + $0xa0] sm:$0xff] }
 0x8f4   : > { %v1761_v20 = vadd.f32 %v1757_v11, %v1729_v15 }
 0x8f9   : > { %v1736_v48 = vpop.permute.xlu1 %1735  ;;  %v1775_v5 = vpop.permute.xlu2 %1774 }
 0x8fa   : > { %v1758_v13 = vmul.f32 %v1747_v40, %v1736_v48  ;;  %v634_v40 = vld [vmem:[%s3423_s6 + $0xb0] sm:$0xff] }
 0x8fb   : > { %1988 = vperm.xlu1 %2447, %v634_v40   ;;  %1939 = vperm.xlu2 %2444, %v634_v40  }
 0x8fc   : > { %v1762_v26 = vadd.f32 %v1758_v13, %v1730_v17 }
 0x901   : > { %v1738_v49 = vpop.permute.xlu0 %1737 }
 0x902   : > { %v1759_v56 = vmul.f32 %v1751_v39, %v1738_v49  ;;  %v1871_v8 = vpop.permute.xlu2 %1870 }
 0x903   : > { %2449 = vset.pattern.permute.xlu1 %v2550_v3  ;;  %2446 = vset.pattern.permute.xlu2 %v2549_v2 }
 0x904   : > { %v1763_v61 = vadd.f32 %v1759_v56, %v1731_v51  ;;  %1992 = vperm.xlu2 %2446, %v635_v10   ;;  %1929 = vperm.xlu1 %2449, %v632_v41   ;;  %v1918_v56 = vstv %s2315_s14  ;;  %s447_s14 = sand.u32 1, %s2538_s28  }
 0x905   : > { %s2187_s22 = scalar_lea.sflag [#allocation4], %s447_s14 }
 0x909   : > { %v1740_v57 = vpop.permute.xlu1 %1739 }
 0x90a   : > { %v1760_v59 = vmul.f32 %v1755_v32, %v1740_v57  ;;  %v1770_v60 = vpop.permute.xlu0 %1769 }
 0x90b   : > { %v1791_v52 = vmul.f32 %v1783_v36, %v1770_v60 }
 0x90c   : > { %v1764_v18 = vadd.f32 %v1760_v59, %v1732_v58  ;;  %1960 = vperm.xlu2 %2446, %v3254_v54   ;;  %2450 = vset.pattern.permute.xlu1 %v2552_v12  ;;  %v587_v54 = vld [vmem:[%s3421_s4 + $0xb8] sm:$0xff]  ;;  %v1861_v59 = vpop.permute.xlu2 %1860 }
 0x90d   : > { %v1795_v6 = vadd.f32 %v1791_v52, %v1763_v61  ;;  %2020 = vperm.xlu1 %2450, %v634_v40  }
 0x90e   : > { %v1796_v7 = vadd.f32 %v1792_v21, %v1764_v18 }
 0x90f   : > { %v1804_v14 = vmul.f32 %v1801_v62, %v1795_v6  ;;  %vm1799_vm15 = vcmp.ge.f32.partialorder %v1795_v6, 0.0 }
 0x910   : > { %vm1800_vm14 = vcmp.ge.f32.partialorder %v1796_v7, 0.0  ;;  %v1805_v16 = vmul.f32 %v1801_v62, %v1796_v7 }
 0x911   : > { %v1766_v23 = vpop.permute.xlu1 %1765  ;;  %v1808_v28 = vsel %vm1799_vm15, %v1795_v6, %v1804_v14 }
 0x912   : > { %v1789_v37 = vmul.f32 %v1775_v5, %v1766_v23  ;;  %v1779_v38 = vpop.permute.xlu0 %1778  ;;  %v1809_v24 = vsel %vm1800_vm14, %v1796_v7, %v1805_v16 }
 0x913   : > { %v1790_v27 = vmul.f32 %v1779_v38, %v1768_v43  ;;  %1838 = vmatpush.msra.mxu3 %v1809_v24 }
 0x914   : > { %v1793_v19 = vadd.f32 %v1789_v37, %v1761_v20  ;;  %1956 = vperm.xlu2 %2446, %v609_v35  }
 0x915   : > { %v1794_v29 = vadd.f32 %v1790_v27, %v1762_v26  ;;  %1839 = vmatpush.msra.mxu3 %v1808_v28  ;;  %2451 = vset.pattern.permute.xlu1 %v2549_v2 }
 0x916   : > { %v1802_v32 = vmul.f32 %v1801_v62, %v1793_v19  ;;  %vm1797_vm1 = vcmp.ge.f32.partialorder %v1793_v19, 0.0  ;;  %1980 = vperm.xlu1 %2451, %v632_v41  }
 0x917   : > { %vm1798_vm0 = vcmp.ge.f32.partialorder %v1794_v29, 0.0  ;;  %v1803_v31 = vmul.f32 %v1801_v62, %v1794_v29 }
 0x918   : > { %v1806_v39 = vsel %vm1797_vm1, %v1793_v19, %v1802_v32 }
 0x919   : > { %v1807_v33 = vsel %vm1798_vm0, %v1794_v29, %v1803_v31  ;;  %v1813_v42 = vpop.permute.xlu1 %1812  ;;  %v659_v29 = vld [vmem:[%s3425_s8 + $0x58] sm:$0xff] }
 0x91a   : > { %1840 = vmatpush.msra.mxu3 %v1807_v33  ;;  %v658_v33 = vld [vmem:[%s3425_s8 + $0x50] sm:$0xff] }
 0x91b   : > { %v1818_v44 = vpop.permute.xlu0 %1817 }
 0x91c   : > { %1841 = vmatpush.msra.mxu3 %v1806_v39  ;;  %1984 = vperm.xlu2 %2446, %v3274_v25  }
 0x91d   : > { %2313 = vmatmul.msk.f32.vlgmr.msra.gmra.mxu3 %vm867_vm13, %v644_v34  ;;  %v2130_v34 = vld [vmem:[%s3426_s9] sm:$0xff] }
 0x91e   : > { %2454 = vset.pattern.permute.xlu1 %v2550_v3 }
 0x923   : > { %v1856_v46 = vpop.permute.xlu0 %1855 }
 0x924   : > { %1952 = vperm.xlu2 %2446, %v3263_v63   ;;  %v1866_v63 = vpop.permute.xlu1 %1865 }
 0x925   : > { %2314 = vmatmul.msk.f32.gmra.mxu3 %vm867_vm13, %v645_v53  ;;  %v2131_v53 = vld [vmem:[%s3426_s9 + $0x8] sm:$0xff] }
 0x92c   : > { %2452 = vset.pattern.permute.xlu2 %v2552_v12  ;;  %v1945_v13 = vpop.permute.xlu1 %1944  ;;  %v1965_v20 = vpop.permute.xlu0 %1964 }
 0x934   : > { %v1935_v15 = vpop.permute.xlu1 %1934 }
 0x935   : > { %v2025_v24 = vpop.permute.xlu0 %2024 }
 0x955   : > { %v1940_v7 = vpop.permute.xlu2 %1939 }
 0x95e   : > { %v1993_v5 = vpop.permute.xlu2 %1992 }
 0x966   : > { %v1961_v16 = vpop.permute.xlu2 %1960 }
 0x96d   : > { %v1989_v14 = vpop.permute.xlu1 %1988 }
 0x96e   : > { %v1957_v17 = vpop.permute.xlu2 %1956 }
 0x976   : > { %v1930_v23 = vpop.permute.xlu1 %1929  ;;  %v1985_v37 = vpop.permute.xlu2 %1984 }
 0x97e   : > { %v1953_v26 = vpop.permute.xlu2 %1952 }
 0x97f   : > { %v2021_v38 = vpop.permute.xlu1 %2020 }
 0x988   : > { %v1981_v27 = vpop.permute.xlu1 %1980 }
 0x9a0   : > { %v1843_v36 = vpop.f32.mrf.mxu3 }
 0x9a1   : > { %v1844_v43 = vadd.f32 %v1843_v36, %v1813_v42 }
 0x9a3   : > { %v3308_v49 = vadd.f32 %v1844_v43, %v3204_v1  ;;  %v586_v1 = vld [vmem:[%s3421_s4 + $0xb0] sm:$0xff] }
 0x9a8   : > { %v1846_v45 = vpop.f32.mrf.mxu3 }
 0x9a9   : > { %v1847_v47 = vadd.f32 %v1846_v45, %v1818_v44 }
 0x9ab   : > { %v3305_v48 = vadd.f32 %v1847_v47, %v3199_v0  ;;  %v585_v0 = vld [vmem:[%s3421_s4 + $0xa8] sm:$0xff] }
 0x9ad   : > { %1899 = vmatpush.msra.mxu2 %v3305_v48 }
 0x9af   : > { %1900 = vmatpush.msra.mxu2 %v3308_v49 }
 0x9b0   : > { %2317 = vmatmul.msk.f32.vlgmr.msra.gmra.mxu2 %vm534_vm4, %v584_v50 }
 0x9b8   : > { %2318 = vmatmul.msk.f32.gmra.mxu2 %vm534_vm4, %v585_v0 }
 0x9c0   : > { %2319 = vmatmul.msk.f32.gmra.mxu2 %vm534_vm4, %v586_v1 }
 0x9c8   : > { %2320 = vmatmul.msk.f32.gmra.mxu2 %vm534_vm4, %v587_v54 }
 0xa33   : > { %v1902_v55 = vpop.f32.mrf.mxu2 }
 0xa34   : > { %v1903_v51 = vadd.f32 %v1902_v55, %v1856_v46  ;;  %v2155_v46 = vld [vmem:[#allocation2] sm:$0x1] }
 0xa36   : > { %v1919_v57 = vmul.f32 %v1918_v56, %v1903_v51  ;;  %vm1914_vm2 = vcmp.ge.f32.partialorder %v1903_v51, 0.0 }
 0xa38   : > { %v3333_v58 = vsel %vm1914_vm2, %v1903_v51, %v1919_v57 }
 0xa39   : > { %1971 = vrot.lane.b32.xlu0 %v3333_v58, %s3444_s26  ;;  %v1947_v47 = vmul.f32 %v1930_v23, %v3333_v58  ;;  %v2092_v23 = vstv %s2323_s24  ;;  %s2199_s24 = sshll.u32 %s2195_s17, 4  ;;  %s2200_s24 = int_to_ptr.hbm [resolvable:$true] %s2199_s24 }
 0xa3a   : > { %s2494_s23 = sshra.s32 %s2200_s24, 4  ;;  %s2495_s23 = int_to_ptr.hbm [resolvable:$true] %s2494_s23 }
 0xa3b   : > { %v1905_v60 = vpop.f32.mrf.mxu2  ;;  %s2496_s0 = scalar_lea.hbm %s2495_s23, 1  ;;  %p2501_p3 = scmp.lt.s32.totalorder %s2495_s23, %s3430_s13 }
 0xa3c   : > { %v1906_v61 = vadd.f32 %v1905_v60, %v1861_v59  ;;  %v1967_v59 = vadd.f32 %v1953_v26, %v1947_v47  ;;  %p2497_p0 = scmp.ne.s32.totalorder %s2495_s23, %s2496_s0 }
 0xa3e   : > { %vm1915_vm3 = vcmp.ge.f32.partialorder %v1906_v61, 0.0  ;;  %v1920_v12 = vmul.f32 %v1918_v56, %v1906_v61  ;;  %p2498_p1 = pnand %p2497_p0, %p2668_p5 }
 0xa40   : > { %v3337_v52 = vsel %vm1915_vm3, %v1906_v61, %v1920_v12  ;;  %p2499_p2 = pneg %p2498_p1 }
 0xa41   : > { %1973 = vrot.lane.b32.xlu1 %v3337_v52, %s3444_s26  ;;  %2005 = vrot.lane.b32.xlu2 %v3337_v52, %s3445_s25  ;;  %v1948_v1 = vmul.f32 %v1935_v15, %v3337_v52  ;;  %v647_v15 = vld [vmem:[%s3424_s7 + $0x58] sm:$0xff] }
 0xa43   : > { %v1908_v4 = vpop.f32.mrf.mxu2  ;;  %v1968_v61 = vadd.f32 %v1957_v17, %v1948_v1 }
 0xa44   : > { %v1909_v21 = vadd.f32 %v1908_v4, %v1866_v63 }
 0xa46   : > { %v1921_v18 = vmul.f32 %v1918_v56, %v1909_v21  ;;  %vm1916_vm5 = vcmp.ge.f32.partialorder %v1909_v21, 0.0 }
 0xa48   : > { %v1925_v9 = vsel %vm1916_vm5, %v1909_v21, %v1921_v18 }
 0xa49   : > { %1975 = vrot.lane.b32.xlu0 %v1925_v9, %s3444_s26  ;;  %v1949_v32 = vmul.f32 %v1940_v7, %v1925_v9 }
 0xa4b   : > { %v1911_v6 = vpop.f32.mrf.mxu2  ;;  %v1969_v40 = vadd.f32 %v1961_v16, %v1949_v32 }
 0xa4c   : > { %v1912_v62 = vadd.f32 %v1911_v6, %v1871_v8  ;;  %v2039_v8 = vstv %s2316_s16  ;;  %s448_s16 = scalar_lea.vmem [#allocation6], %s447_s14 }
 0xa4d   : > { %s2197_s21 = sshll.u32 %s448_s16, 4  ;;  %s2198_s21 = int_to_ptr.vmem [resolvable:$true] %s2197_s21 }
 0xa4e   : > { %vm1917_vm6 = vcmp.ge.f32.partialorder %v1912_v62, 0.0  ;;  %v1922_v10 = vmul.f32 %v1918_v56, %v1912_v62 }
 0xa50   : > { %v1926_v11 = vsel %vm1917_vm6, %v1912_v62, %v1922_v10 }
 0xa51   : > { %2009 = vrot.lane.b32.xlu2 %v1926_v11, %s3445_s25  ;;  %1977 = vrot.lane.b32.xlu1 %v1926_v11, %s3444_s26  ;;  %v1950_v39 = vmul.f32 %v1945_v13, %v1926_v11  ;;  %v646_v13 = vld [vmem:[%s3424_s7 + $0x50] sm:$0xff]  ;;  %s2500_s26 = scalar_lea.hbm %s3430_s13, 4 }
 0xa52   : > { %2007 = vrot.lane.b32.xlu0 %v1925_v9, %s3445_s25  ;;  %p2502_p4 = scmp.lt.s32.totalorder %s2500_s26, %s2496_s0 }
 0xa54   : > { %p2503_p7 = por %p2502_p4, %p2501_p3 }
 0xa56   : > { %p2504_p8 = pnand %p2503_p7, %p2499_p2 }
 0xa59   : > { %2003 = vrot.lane.b32.xlu1 %v3333_v58, %s3445_s25  ;;  %2012 = vperm.xlu2 %2452, %v632_v41   ;;  %v1970_v41 = vadd.f32 %v1965_v20, %v1950_v39 }
 0xa5a   : > { %2016 = vperm.xlu0 %2448, %v3274_v25  }
 0xa61   : > { %2455 = vset.pattern.permute.xlu2 %v2550_v3  ;;  %2055 = vperm.xlu1 %2454, %v659_v29  }
 0xa62   : > { %2453 = vset.pattern.permute.xlu0 %v2550_v3  ;;  %2139 = vperm.xlu2 %2455, %v2131_v53  }
 0xa63   : > { %2050 = vperm.xlu0 %2453, %v658_v33  }
 0xa69   : > { %2134 = vperm.xlu1 %2454, %v2130_v34  }
 0xa6a   : > { %2456 = vset.pattern.permute.xlu2 %v2549_v2 }
 0xa6b   : > { %2457 = vset.pattern.permute.xlu0 %v2549_v2  ;;  %2149 = vperm.xlu2 %2456, %v2131_v53  }
 0xa6c   : > { %2145 = vperm.xlu0 %2457, %v2130_v34  }
 0xa71   : > { %2158 = vperm.xlu1 %2454, %v2155_v46  }
 0xa74   : > { %2458 = vset.pattern.permute.xlu0 %v2550_v3 }
 0xa9b   : > { %v2006_v28 = vpop.permute.xlu2 %2005 }
 0xaab   : > { %v1972_v19 = vpop.permute.xlu0 %1971  ;;  %v2010_v30 = vpop.permute.xlu2 %2009 }
 0xaac   : > { %v2030_v50 = vmul.f32 %v2025_v24, %v2010_v30  ;;  %v1995_v55 = vmul.f32 %v1981_v27, %v1972_v19 }
 0xaae   : > { %v1999_v52 = vadd.f32 %v1995_v55, %v1967_v59 }
 0xab3   : > { %v1974_v25 = vpop.permute.xlu1 %1973  ;;  %v2013_v57 = vpop.permute.xlu2 %2012 }
 0xab4   : > { %v1996_v51 = vmul.f32 %v1985_v37, %v1974_v25 }
 0xab6   : > { %v2000_v18 = vadd.f32 %v1996_v51, %v1968_v61 }
 0xabb   : > { %v1976_v31 = vpop.permute.xlu0 %1975 }
 0xabc   : > { %v1997_v35 = vmul.f32 %v1989_v14, %v1976_v31 }
 0xabe   : > { %v2001_v45 = vadd.f32 %v1997_v35, %v1969_v40 }
 0xac3   : > { %v1978_v36 = vpop.permute.xlu1 %1977 }
 0xac4   : > { %v1998_v42 = vmul.f32 %v1993_v5, %v1978_v36  ;;  %v2008_v44 = vpop.permute.xlu0 %2007 }
 0xac5   : > { %v2029_v43 = vmul.f32 %v2021_v38, %v2008_v44 }
 0xac6   : > { %v2002_v0 = vadd.f32 %v1998_v42, %v1970_v41 }
 0xac7   : > { %v2033_v54 = vadd.f32 %v2029_v43, %v2001_v45 }
 0xac8   : > { %v2034_v56 = vadd.f32 %v2030_v50, %v2002_v0 }
 0xac9   : > { %v2042_v58 = vmul.f32 %v2039_v8, %v2033_v54  ;;  %vm2037_vm8 = vcmp.ge.f32.partialorder %v2033_v54, 0.0 }
 0xaca   : > { %vm2038_vm7 = vcmp.ge.f32.partialorder %v2034_v56, 0.0  ;;  %v2043_v60 = vmul.f32 %v2039_v8, %v2034_v56 }
 0xacb   : > { %v2004_v12 = vpop.permute.xlu1 %2003  ;;  %v2046_v62 = vsel %vm2037_vm8, %v2033_v54, %v2042_v58 }
 0xacc   : > { %v2027_v63 = vmul.f32 %v2013_v57, %v2004_v12  ;;  %v2017_v4 = vpop.permute.xlu0 %2016  ;;  %v2047_v21 = vsel %vm2038_vm7, %v2034_v56, %v2043_v60 }
 0xacd   : > { %v2028_v9 = vmul.f32 %v2017_v4, %v2006_v28  ;;  %2076 = vmatpush.msra.mxu1 %v2047_v21  ;;  %v2154_v4 = vld [vmem:[%s3427_s10] sm:$0x1] }
 0xace   : > { %v2031_v6 = vadd.f32 %v2027_v63, %v1999_v52 }
 0xacf   : > { %v2032_v10 = vadd.f32 %v2028_v9, %v2000_v18  ;;  %2077 = vmatpush.msra.mxu1 %v2046_v62 }
 0xad0   : > { %v2040_v11 = vmul.f32 %v2039_v8, %v2031_v6  ;;  %vm2035_vm10 = vcmp.ge.f32.partialorder %v2031_v6, 0.0 }
 0xad1   : > { %vm2036_vm9 = vcmp.ge.f32.partialorder %v2032_v10, 0.0  ;;  %v2041_v2 = vmul.f32 %v2039_v8, %v2032_v10  ;;  %v2140_v8 = vpop.permute.xlu2 %2139 }
 0xad2   : > { %v2044_v5 = vsel %vm2035_vm10, %v2031_v6, %v2040_v11 }
 0xad3   : > { %v2045_v7 = vsel %vm2036_vm9, %v2032_v10, %v2041_v2  ;;  %v2056_v20 = vpop.permute.xlu1 %2055 }
 0xad4   : > { %2078 = vmatpush.msra.mxu1 %v2045_v7 }
 0xad5   : > { %v2051_v16 = vpop.permute.xlu0 %2050 }
 0xad6   : > { %2079 = vmatpush.msra.mxu1 %v2044_v5 }
 0xad7   : > { %2321 = vmatmul.msk.f32.vlgmr.msra.gmra.mxu1 %vm867_vm13, %v646_v13 }
 0xad9   : > { %v2150_v58 = vpop.permute.xlu2 %2149 }
 0xadb   : > { %v2135_v60 = vpop.permute.xlu1 %2134 }
 0xade   : > { %v2146_v12 = vpop.permute.xlu0 %2145 }
 0xadf   : > { %2322 = vmatmul.msk.f32.gmra.mxu1 %vm867_vm13, %v647_v15 }
 0xae3   : > { %v2159_v21 = vpop.permute.xlu1 %2158 }
 0xae4   : > { %v2161_v18 = vperm.slane %v2159_v21, 0 }
 0xb54   : > { %v2081_v14 = vpop.f32.mrf.mxu1 }
 0xb55   : > { %v2082_v3 = vadd.f32 %v2081_v14, %v2051_v16 }
 0xb57   : > { %v2087_v17 = vadd.f32 %v2082_v3, %v3308_v49 }
 0xb59   : > { %v2093_v24 = vmul.f32 %v2092_v23, %v2087_v17  ;;  %vm2090_vm11 = vcmp.ge.f32.partialorder %v2087_v17, 0.0 }
 0xb5b   : > { %v2095_v19 = vsel %vm2090_vm11, %v2087_v17, %v2093_v24 }
 0xb5c   : > { %v2084_v37 = vpop.f32.mrf.mxu1 }
 0xb5d   : > { %v2085_v38 = vadd.f32 %v2084_v37, %v2056_v20 }
 0xb5f   : > { %v2088_v26 = vadd.f32 %v2085_v38, %v3305_v48 }
 0xb61   : > { %vm2091_vm12 = vcmp.ge.f32.partialorder %v2088_v26, 0.0  ;;  %v2094_v27 = vmul.f32 %v2092_v23, %v2088_v26 }
 0xb63   : > { %v2096_v28 = vsel %vm2091_vm12, %v2088_v26, %v2094_v27 }
 0xb64   : > { %v2097_v29 = vadd.f32 %v2096_v28, %v2095_v19 }
 0xb66   : > { %v2098_v25 = vrot.slane %v2097_v29, 4 }
 0xb68   : > { %v2099_v31 = vadd.f32 %v2098_v25, %v2097_v29 }
 0xb6a   : > { %v2100_v32 = vrot.slane %v2099_v31, 2 }
 0xb6c   : > { %v2101_v33 = vadd.f32 %v2100_v32, %v2099_v31 }
 0xb6e   : > { %v2102_v34 = vrot.slane %v2101_v33, 1 }
 0xb70   : > { %v2103_v39 = vadd.f32 %v2102_v34, %v2101_v33 }
 0xb72   : > { %v2104_v49 = vmul.f32 %v2103_v39, %v2707_v22 }
 0xb74   : > { %v2106_v53 = vsub.f32 %v2096_v28, %v2104_v49  ;;  %v2105_v30 = vsub.f32 %v2095_v19, %v2104_v49 }
 0xb76   : > { %v2108_v35 = vmul.f32 %v2106_v53, %v2106_v53  ;;  %v2107_v40 = vmul.f32 %v2105_v30, %v2105_v30 }
 0xb78   : > { %v2109_v36 = vadd.f32 %v2108_v35, %v2107_v40 }
 0xb7a   : > { %v2110_v48 = vrot.slane %v2109_v36, 4 }
 0xb7c   : > { %v2111_v41 = vadd.f32 %v2110_v48, %v2109_v36 }
 0xb7e   : > { %v2112_v42 = vrot.slane %v2111_v41, 2 }
 0xb80   : > { %v2113_v44 = vadd.f32 %v2112_v42, %v2111_v41 }
 0xb82   : > { %v2114_v45 = vrot.slane %v2113_v44, 1 }
 0xb84   : > { %v2115_v43 = vadd.f32 %v2114_v45, %v2113_v44 }
 0xb86   : > { %v2116_v47 = vmul.f32 %v2115_v43, %v2707_v22 }
 0xb88   : > { %v2117_v50 = vadd.f32 1e-08, %v2116_v47 }
 0xb8a   : > { %2463 = vrsqrt.f32 %v2117_v50  ;;  %vm2124_vm14 = vweird.f32 %v2117_v50 }
 0xb90   : > { %v2464_v0 = vpop.eup %2463 }
 0xb91   : > { %v2119_v1 = vmul.f32 %v2464_v0, %v2117_v50  ;;  %vm2125_vm13 = vweird.f32 %v2464_v0 }
 0xb92   : > { %vm2126_vm15 = vmor %vm2124_vm14, %vm2125_vm13 }
 0xb93   : > { %v2120_v54 = vmul.f32 %v2464_v0, %v2119_v1 }
 0xb95   : > { %v2121_v46 = vmul.f32 0.5, %v2120_v54 }
 0xb97   : > { %v2122_v55 = vsub.f32 1.5, %v2121_v46 }
 0xb99   : > { %v2123_v56 = vmul.f32 %v2464_v0, %v2122_v55 }
 0xb9b   : > { %v2127_v51 = vsel %vm2126_vm15, %v2464_v0, %v2123_v56 }
 0xb9c   : > { %v2128_v57 = vmul.f32 %v2127_v51, %v2105_v30  ;;  %v2129_v59 = vmul.f32 %v2127_v51, %v2106_v53 }
 0xb9e   : > { %v2142_v22 = vmul.f32 %v2135_v60, %v2128_v57  ;;  %v2143_v61 = vmul.f32 %v2140_v8, %v2129_v59 }
 0xba0   : > { %v2153_v52 = vadd.f32 %v2150_v58, %v2143_v61  ;;  %v2152_v63 = vadd.f32 %v2146_v12, %v2142_v22 }
 0xba2   : > { %2179 = vmatpush.msrb.mxu3 %v2153_v52 }
 0xba4   : > { %2180 = vmatpush.msrb.mxu3 %v2152_v63 }
 0xba5   : > { %2324 = vmatmul.msk.f32.vlgmr.msrb.gmra.mxu3 %vm534_vm4, %v2154_v4 }
 0xc28   : > { %v2182_v9 = vpop.f32.mrf.mxu3 }
 0xc29   : > { %v2183_v6 = vadd.f32 %v2182_v9, %v2161_v18 }
 0xc2b   : > { %2185 = vst [vmem:[%s448_s16] sm:$0x1] %v2183_v6 }
 0xc2c   : > { %2507 = shalt.err (!%p2504_p8)
}
 0xc2d   : > { %2332 = dma.vmem_to_hbm [thread:$0]  (%p2668_p5), %s2198_s21, 16, %s2200_s24, %s2187_s22  }
 0xc2e PF: > { %p2344_p9 = scmp.ge.s32.totalorder %s2546_s30, 2  ;;  %s2211_s14 = sand.u32 1, %s2534_s27  }
 0xc2f   : > { %s2212_s16 = scalar_lea.sflag [#allocation4], %s2211_s14 }
 0xc30   : > { %p2339_p10 = pnand %p2344_p9, %p2672_p6 }
 0xc32   : > { %p2340_p11 = pneg %p2339_p10 }
 0xc34   : > { %2529 = dma.done.wait (%p2340_p11), %s2212_s16, 16  }
 0xc35   : > { %2531 = vsyncadd (%p2340_p11), %s2212_s16, 4294967280  ;;  %p26_p12 = scmp.ge.s32.totalorder %s2655_s15, 6   ;;  %s3446_s27 = smov %s2538_s28 }
 0xc36   : > { %s3447_s28 = smov %s2542_s29  ;;  %s3448_s29 = smov %s2666_s18 }
 0xc37   : > { %s3449_s30 = smov %s2655_s15  ;;  %28 = sbr.rel (!%p26_p12) target bundleno = 7 (0x7), region = 112 }
 0xc3c   :  { %2217 = vsyncpa [#allocation4], 1 }
 0xc3d   :  { %2219 = vsyncpa [#allocation4 + $0x1], 1 }
 0xc3e   :  { %2220 = vsyncpa [#allocation5], 1 }
 0xc3f   :  { %2222 = vsyncpa [#allocation5 + $0x1], 1 }

</bundles_post_ra>
